<compile_context>
chip_gen: v7x
topology: tpu7x:2x2x1
jax: 0.10.0
libtpu: 0.0.40
codegen_flags: <defaults>
</compile_context>

<pallas_src>
import math

import jax
import jax.numpy as jnp
from jax.experimental import pallas as pl
from jax.experimental.pallas import tpu as pltpu

KSIZE = 7
PAD = 3


def _make_kernel(HW, W):
    def kernel(mask_ref, red_ref, x_ref, tapw_ref, p_ref,
               out_im_ref, out_sub_ref, maps_sc):
        # mask_ref: (C, 1)        VMEM  -- 1.0 for top-k ("important") channels
        # red_ref:  (8, C)        VMEM  -- row0 = mask/C_im, row1 = (1-mask)/C_subim
        # x_ref:    (C, HW)       VMEM  -- one batch element, spatially flattened
        # tapw_ref: (49, 4, HW)   VMEM  -- per-tap [w0,w1,w0,w1]*bn_scale*pad_valid
        # p_ref:    (1,)          SMEM  -- conv_bias*bn_scale + bn_shift
        # maps_sc:  (4, HW)       VMEM scratch -- stacked conv inputs
        x = x_ref[...].astype(jnp.float32)            # (C, HW)
        im_m = mask_ref[...].astype(jnp.float32)      # (C, 1)

        # ---- channel reductions -------------------------------------------
        # Channel sums on the MXU (idle otherwise): the reducer rows already
        # contain the mask and the 1/C_im, 1/C_subim normalizations, so the
        # dot directly yields avg_im (row 0) and avg_sub (row 1).
        avg = jnp.dot(red_ref[...], x,
                      preferred_element_type=jnp.float32)   # (8, HW)

        im_feat = im_m * x                            # (C, HW)
        # Maxima over the masked tensors (masked-out zeros participate,
        # matching torch.max over mask*x / (1-mask)*x).
        max_im = jnp.max(im_feat, axis=0, keepdims=True)
        max_sub = jnp.max(x - im_feat, axis=0, keepdims=True)

        # Stack conv inputs: rows [avg_im, max_im, avg_sub, max_sub].
        maps_sc[0:1, :] = avg[0:1, :]
        maps_sc[1:2, :] = max_im
        maps_sc[2:3, :] = avg[1:2, :]
        maps_sc[3:4, :] = max_sub
        maps = maps_sc[...]                           # (4, HW)

        # ---- 7x7 conv (zero pad 3), both branches in one tap loop ----------
        # Each tap: one lane rotation (XLU) shared by all 4 rows, then a
        # single multiply by the precomputed (4, HW) tap weight (conv weight
        # * BN scale * boundary mask folded in the wrapper) and an add.
        acc0 = jnp.zeros((4, HW), jnp.float32)
        acc1 = jnp.zeros((4, HW), jnp.float32)
        for t in range(KSIZE * KSIZE):
            ky, kx = divmod(t, KSIZE)
            off = (ky - PAD) * W + (kx - PAD)         # flat source offset
            sh = (-off) % HW                          # jnp.roll-style shift
            shifted = maps if sh == 0 else pltpu.roll(maps, sh, axis=1)
            tap = shifted * tapw_ref[t]               # (4, HW)
            if t % 2 == 0:
                acc0 = acc0 + tap
            else:
                acc1 = acc1 + tap
        acc = acc0 + acc1                             # (4, HW)

        # Collapse rows 0+1 -> im pre-activation, 2+3 -> sub pre-activation;
        # conv bias + BN shift folded into one scalar; ReLU; sigmoid
        # (exp + approximate reciprocal both land on the EUP slot).
        shift = p_ref[0]
        y_im = jnp.maximum(acc[0:1, :] + acc[1:2, :] + shift, 0.0)
        y_sub = jnp.maximum(acc[2:3, :] + acc[3:4, :] + shift, 0.0)
        im_map = pl.reciprocal(1.0 + jnp.exp(-y_im), approx=True)
        sub_map = pl.reciprocal(1.0 + jnp.exp(-y_sub), approx=True)

        # ---- gating (lane-dense stores in the caller's dtype) --------------
        out_im_ref[...] = (im_map * im_feat).astype(out_im_ref.dtype)
        out_sub_ref[...] = (sub_map * (x - im_feat)).astype(out_sub_ref.dtype)

    return kernel


class SpatialAttentionHAM:
    def __init__(self, in_channel, separation_rate, key):
        self.in_channel = in_channel
        h = separation_rate * in_channel
        self.C_im = int(h) if int(h) % 2 == 0 else int(h) + 1
        self.C_subim = in_channel - self.C_im
        assert 0 < self.C_im < in_channel, "need both branches non-empty"

        # deterministic parameter init (matches PyTorch Conv2d default bounds)
        k_w, k_b = jax.random.split(key)
        fan_in = 2 * KSIZE * KSIZE
        bound = 1.0 / math.sqrt(fan_in)
        self.conv_w = jax.random.uniform(k_w, (2, KSIZE, KSIZE), jnp.float32,
                                         -bound, bound)
        self.conv_b = jax.random.uniform(k_b, (), jnp.float32, -bound, bound)
        # BatchNorm2d(1) default params / running stats (eval mode)
        self.bn_gamma = jnp.float32(1.0)
        self.bn_beta = jnp.float32(0.0)
        self.bn_mean = jnp.float32(0.0)
        self.bn_var = jnp.float32(1.0)
        self.bn_eps = jnp.float32(1e-5)

    def __call__(self, x, M, io_dtype=None):
        # TODO(synk): pass io_dtype=jnp.bfloat16 (and bf16 x) to halve the
        # 3x C*HW per-batch HBM traffic; accumulation stays f32 in-kernel.
        B, C, H, W = x.shape
        assert C == self.in_channel
        HW = H * W
        out_dtype = x.dtype if io_dtype is None else io_dtype

        # --- glue (plain JAX): top-k channel selection -> {0,1} mask ---
        Mv = M.reshape(B, C)
        _, topk_idx = jax.lax.top_k(Mv, self.C_im)
        mask2d = jnp.zeros((B, C), jnp.float32).at[
            jnp.arange(B)[:, None], topk_idx].set(1.0)
        im_mask = mask2d.reshape(B, C, 1)

        # MXU channel-sum reducer: row 0 -> avg_im, row 1 -> avg_sub
        # (rows 2..7 are zero padding so the dot has a full 8-sublane LHS).
        # mean(mask*x over C) * C/C_im == sum(mask*x)/C_im, matching PyTorch.
        reducer = jnp.zeros((B, 8, C), jnp.float32)
        reducer = reducer.at[:, 0, :].set(mask2d / float(self.C_im))
        reducer = reducer.at[:, 1, :].set((1.0 - mask2d) / float(self.C_subim))

        # lane-dense layout: (B, C, H*W); H*W maps to the 128-lane axis.
        x_flat = x.reshape(B, C, HW).astype(out_dtype)

        # Fold conv weights, BN(eval) scale and zero-pad validity into one
        # per-tap (4, HW) weight map: rows [w0, w1, w0, w1] * bn_scale * valid.
        bn_scale = self.bn_gamma * jax.lax.rsqrt(self.bn_var + self.bn_eps)
        bn_shift = self.bn_beta - self.bn_mean * bn_scale
        idx = jnp.arange(HW, dtype=jnp.int32)
        row = idx // W
        col = idx % W
        taps = []
        for t in range(KSIZE * KSIZE):
            ky, kx = divmod(t, KSIZE)
            dy, dx = ky - PAD, kx - PAD
            valid = ((row + dy >= 0) & (row + dy < H) &
                     (col + dx >= 0) & (col + dx < W)).astype(jnp.float32)
            w0 = self.conv_w[0, ky, kx] * bn_scale
            w1 = self.conv_w[1, ky, kx] * bn_scale
            wcol = jnp.stack([w0, w1, w0, w1]).reshape(4, 1)
            taps.append(wcol * valid[None, :])
        tapw = jnp.stack(taps, axis=0)                       # (49, 4, HW)

        # conv bias + BN shift folded into a single scalar (SMEM)
        params = jnp.reshape(self.conv_b * bn_scale + bn_shift,
                             (1,)).astype(jnp.float32)

        # VMEM limit: ~3/4 of physical -> ~96 MiB on v5e/v6e, ~48 MiB on v7x.
        try:
            vmem_cap = pltpu.get_tpu_info().vmem_capacity_bytes
        except Exception:
            vmem_cap = 128 * 1024 * 1024
        vmem_limit = int(min(96 * 1024 * 1024, vmem_cap * 3 // 4))

        kernel = _make_kernel(HW, W)

        grid_spec = pltpu.PrefetchScalarGridSpec(
            num_scalar_prefetch=0,
            grid=(B,),
            in_specs=[
                pl.BlockSpec((None, C, 1), lambda b: (b, 0, 0)),      # mask
                pl.BlockSpec((None, 8, C), lambda b: (b, 0, 0)),      # reducer
                pl.BlockSpec((None, C, HW), lambda b: (b, 0, 0)),     # x
                pl.BlockSpec((KSIZE * KSIZE, 4, HW),
                             lambda b: (0, 0, 0)),                    # tap weights
                pl.BlockSpec(memory_space=pltpu.MemorySpace.SMEM),    # affine shift
            ],
            out_specs=[
                pl.BlockSpec((None, C, HW), lambda b: (b, 0, 0)),
                pl.BlockSpec((None, C, HW), lambda b: (b, 0, 0)),
            ],
            scratch_shapes=[pltpu.VMEM((4, HW), jnp.float32)],
        )

        out_im, out_sub = pl.pallas_call(
            kernel,
            grid_spec=grid_spec,
            out_shape=(jax.ShapeDtypeStruct((B, C, HW), out_dtype),
                       jax.ShapeDtypeStruct((B, C, HW), out_dtype)),
            compiler_params=pltpu.CompilerParams(
                # batch steps are independent -> megacore sharding on v7x
                dimension_semantics=("parallel",),
                vmem_limit_bytes=vmem_limit),
        )(im_mask, reducer, x_flat, tapw, params)

        return (out_im.reshape(B, C, H, W), out_sub.reshape(B, C, H, W))


if __name__ == "__main__":
    key = jax.random.PRNGKey(0)
    k_x, k_m, k_p = jax.random.split(key, 3)

    B, C, H, W = 2, 8, 16, 16
    x = jax.random.normal(k_x, (B, C, H, W), dtype=jnp.float32)
    M = jax.random.normal(k_m, (B, C, 1, 1), dtype=jnp.float32)

    mod = SpatialAttentionHAM(in_channel=C, separation_rate=0.5, key=k_p)
    out_im, out_sub = mod(x, M)
    jax.block_until_ready((out_im, out_sub))

    assert out_im.shape == (B, C, H, W)
    assert out_sub.shape == (B, C, H, W)
    assert bool(jnp.all(jnp.isfinite(out_im)))
    assert bool(jnp.all(jnp.isfinite(out_sub)))
    print("KERNEL_OK")
</pallas_src>

<mosaic_0001>
module attributes {stable_mosaic.version = 11 : i64} {
  func.func @kernel(%arg0: i32, %arg1: memref<1x8x1xf32, #tpu.memory_space<vmem>>, %arg2: memref<1x8x8xf32, #tpu.memory_space<vmem>>, %arg3: memref<1x8x256xf32, #tpu.memory_space<vmem>>, %arg4: memref<49x4x256xf32, #tpu.memory_space<vmem>>, %arg5: memref<1xf32, #tpu.memory_space<smem>>, %arg6: memref<1x8x256xf32, #tpu.memory_space<vmem>>, %arg7: memref<1x8x256xf32, #tpu.memory_space<vmem>>, %arg8: memref<4x256xf32, #tpu.memory_space<vmem>>) attributes {dimension_semantics = [#tpu.dimension_semantics<parallel>], iteration_bounds = array<i64: 2>, scalar_prefetch = 0 : i64, scratch_operands = 1 : i64, tpu.core_type = #tpu.core_type<tc>, window_params = [{transform_indices = @transform_0, window_bounds = array<i64: 1, 8, 1>}, {transform_indices = @transform_1, window_bounds = array<i64: 1, 8, 8>}, {transform_indices = @transform_2, window_bounds = array<i64: 1, 8, 256>}, {pipeline_mode = #tpu.pipeline_mode<synchronous>, transform_indices = @transform_3, window_bounds = array<i64: 49, 4, 256>}, {transform_indices = @transform_4, window_bounds = array<i64: 1>}, {transform_indices = @transform_5, window_bounds = array<i64: 1, 8, 256>}, {transform_indices = @transform_6, window_bounds = array<i64: 1, 8, 256>}]} {
    %c0 = arith.constant 0 : index
    %c0_0 = arith.constant 0 : index
    %c0_1 = arith.constant 0 : index
    %0 = vector.load %arg3[%c0, %c0_0, %c0_1] : memref<1x8x256xf32, #tpu.memory_space<vmem>>, vector<1x8x256xf32>
    %1 = vector.shape_cast %0 : vector<1x8x256xf32> to vector<8x256xf32>
    %c0_2 = arith.constant 0 : index
    %c0_3 = arith.constant 0 : index
    %c0_4 = arith.constant 0 : index
    %2 = vector.load %arg1[%c0_2, %c0_3, %c0_4] : memref<1x8x1xf32, #tpu.memory_space<vmem>>, vector<1x8x1xf32>
    %3 = vector.shape_cast %2 : vector<1x8x1xf32> to vector<8x1xf32>
    %c0_5 = arith.constant 0 : index
    %c0_6 = arith.constant 0 : index
    %c0_7 = arith.constant 0 : index
    %4 = vector.load %arg2[%c0_5, %c0_6, %c0_7] : memref<1x8x8xf32, #tpu.memory_space<vmem>>, vector<1x8x8xf32>
    %5 = vector.shape_cast %4 : vector<1x8x8xf32> to vector<8x8xf32>
    %cst = arith.constant dense<0.000000e+00> : vector<8x256xf32>
    %6 = tpu.matmul %5, %1, %cst {dimension_numbers = #tpu.dot_dimension_numbers<[1], [0], [0], [1], [0, 0, 1, 1], [], []>} : vector<8x8xf32>, vector<8x256xf32>, vector<8x256xf32> -> vector<8x256xf32>
    %7 = vector.broadcast %3 : vector<8x1xf32> to vector<8x256xf32>
    %8 = arith.mulf %7, %1 : vector<8x256xf32>
    %cst_8 = arith.constant dense<0xFF800000> : vector<256xf32>
    %9 = vector.multi_reduction <maximumf>, %8, %cst_8 [0] : vector<8x256xf32> to vector<256xf32>
    %10 = vector.shape_cast %9 : vector<256xf32> to vector<1x256xf32>
    %11 = arith.subf %1, %8 : vector<8x256xf32>
    %cst_9 = arith.constant dense<0xFF800000> : vector<256xf32>
    %12 = vector.multi_reduction <maximumf>, %11, %cst_9 [0] : vector<8x256xf32> to vector<256xf32>
    %13 = vector.shape_cast %12 : vector<256xf32> to vector<1x256xf32>
    %14 = vector.extract_strided_slice %6 {offsets = [0, 0], sizes = [1, 256], strides = [1, 1]} : vector<8x256xf32> to vector<1x256xf32>
    %c0_10 = arith.constant 0 : index
    %c0_11 = arith.constant 0 : index
    %15 = vector.load %arg8[%c0_10, %c0_11] : memref<4x256xf32, #tpu.memory_space<vmem>>, vector<1x256xf32>
    tpu.vector_store %arg8[%c0_10, %c0_11], %14 {strides = array<i32>} : memref<4x256xf32, #tpu.memory_space<vmem>>, vector<1x256xf32>,
    %c1 = arith.constant 1 : index
    %c0_12 = arith.constant 0 : index
    %16 = vector.load %arg8[%c1, %c0_12] : memref<4x256xf32, #tpu.memory_space<vmem>>, vector<1x256xf32>
    tpu.vector_store %arg8[%c1, %c0_12], %10 {strides = array<i32>} : memref<4x256xf32, #tpu.memory_space<vmem>>, vector<1x256xf32>,
    %17 = vector.extract_strided_slice %6 {offsets = [1, 0], sizes = [1, 256], strides = [1, 1]} : vector<8x256xf32> to vector<1x256xf32>
    %c2 = arith.constant 2 : index
    %c0_13 = arith.constant 0 : index
    %18 = vector.load %arg8[%c2, %c0_13] : memref<4x256xf32, #tpu.memory_space<vmem>>, vector<1x256xf32>
    tpu.vector_store %arg8[%c2, %c0_13], %17 {strides = array<i32>} : memref<4x256xf32, #tpu.memory_space<vmem>>, vector<1x256xf32>,
    %c3 = arith.constant 3 : index
    %c0_14 = arith.constant 0 : index
    %19 = vector.load %arg8[%c3, %c0_14] : memref<4x256xf32, #tpu.memory_space<vmem>>, vector<1x256xf32>
    tpu.vector_store %arg8[%c3, %c0_14], %13 {strides = array<i32>} : memref<4x256xf32, #tpu.memory_space<vmem>>, vector<1x256xf32>,
    %c0_15 = arith.constant 0 : index
    %c0_16 = arith.constant 0 : index
    %20 = vector.load %arg8[%c0_15, %c0_16] : memref<4x256xf32, #tpu.memory_space<vmem>>, vector<4x256xf32>
    %cst_17 = arith.constant 0.000000e+00 : f32
    %21 = vector.broadcast %cst_17 : f32 to vector<4x256xf32>
    %cst_18 = arith.constant 0.000000e+00 : f32
    %22 = vector.broadcast %cst_18 : f32 to vector<4x256xf32>
    %c51_i32 = arith.constant 51 : i32
    %23 = tpu.dynamic_rotate %20 by %c51_i32 dim 1 : vector<4x256xf32>, i32 -> vector<4x256xf32>
    %c0_19 = arith.constant 0 : index
    %c0_20 = arith.constant 0 : index
    %c0_21 = arith.constant 0 : index
    %24 = vector.load %arg4[%c0_19, %c0_20, %c0_21] : memref<49x4x256xf32, #tpu.memory_space<vmem>>, vector<1x4x256xf32>
    %25 = vector.shape_cast %24 : vector<1x4x256xf32> to vector<4x256xf32>
    %26 = arith.mulf %23, %25 : vector<4x256xf32>
    %27 = arith.addf %21, %26 : vector<4x256xf32>
    %c50_i32 = arith.constant 50 : i32
    %28 = tpu.dynamic_rotate %20 by %c50_i32 dim 1 : vector<4x256xf32>, i32 -> vector<4x256xf32>
    %c1_22 = arith.constant 1 : index
    %c0_23 = arith.constant 0 : index
    %c0_24 = arith.constant 0 : index
    %29 = vector.load %arg4[%c1_22, %c0_23, %c0_24] : memref<49x4x256xf32, #tpu.memory_space<vmem>>, vector<1x4x256xf32>
    %30 = vector.shape_cast %29 : vector<1x4x256xf32> to vector<4x256xf32>
    %31 = arith.mulf %28, %30 : vector<4x256xf32>
    %32 = arith.addf %22, %31 : vector<4x256xf32>
    %c49_i32 = arith.constant 49 : i32
    %33 = tpu.dynamic_rotate %20 by %c49_i32 dim 1 : vector<4x256xf32>, i32 -> vector<4x256xf32>
    %c2_25 = arith.constant 2 : index
    %c0_26 = arith.constant 0 : index
    %c0_27 = arith.constant 0 : index
    %34 = vector.load %arg4[%c2_25, %c0_26, %c0_27] : memref<49x4x256xf32, #tpu.memory_space<vmem>>, vector<1x4x256xf32>
    %35 = vector.shape_cast %34 : vector<1x4x256xf32> to vector<4x256xf32>
    %36 = arith.mulf %33, %35 : vector<4x256xf32>
    %37 = arith.addf %27, %36 : vector<4x256xf32>
    %c48_i32 = arith.constant 48 : i32
    %38 = tpu.dynamic_rotate %20 by %c48_i32 dim 1 : vector<4x256xf32>, i32 -> vector<4x256xf32>
    %c3_28 = arith.constant 3 : index
    %c0_29 = arith.constant 0 : index
    %c0_30 = arith.constant 0 : index
    %39 = vector.load %arg4[%c3_28, %c0_29, %c0_30] : memref<49x4x256xf32, #tpu.memory_space<vmem>>, vector<1x4x256xf32>
    %40 = vector.shape_cast %39 : vector<1x4x256xf32> to vector<4x256xf32>
    %41 = arith.mulf %38, %40 : vector<4x256xf32>
    %42 = arith.addf %32, %41 : vector<4x256xf32>
    %c47_i32 = arith.constant 47 : i32
    %43 = tpu.dynamic_rotate %20 by %c47_i32 dim 1 : vector<4x256xf32>, i32 -> vector<4x256xf32>
    %c4 = arith.constant 4 : index
    %c0_31 = arith.constant 0 : index
    %c0_32 = arith.constant 0 : index
    %44 = vector.load %arg4[%c4, %c0_31, %c0_32] : memref<49x4x256xf32, #tpu.memory_space<vmem>>, vector<1x4x256xf32>
    %45 = vector.shape_cast %44 : vector<1x4x256xf32> to vector<4x256xf32>
    %46 = arith.mulf %43, %45 : vector<4x256xf32>
    %47 = arith.addf %37, %46 : vector<4x256xf32>
    %c46_i32 = arith.constant 46 : i32
    %48 = tpu.dynamic_rotate %20 by %c46_i32 dim 1 : vector<4x256xf32>, i32 -> vector<4x256xf32>
    %c5 = arith.constant 5 : index
    %c0_33 = arith.constant 0 : index
    %c0_34 = arith.constant 0 : index
    %49 = vector.load %arg4[%c5, %c0_33, %c0_34] : memref<49x4x256xf32, #tpu.memory_space<vmem>>, vector<1x4x256xf32>
    %50 = vector.shape_cast %49 : vector<1x4x256xf32> to vector<4x256xf32>
    %51 = arith.mulf %48, %50 : vector<4x256xf32>
    %52 = arith.addf %42, %51 : vector<4x256xf32>
    %c45_i32 = arith.constant 45 : i32
    %53 = tpu.dynamic_rotate %20 by %c45_i32 dim 1 : vector<4x256xf32>, i32 -> vector<4x256xf32>
    %c6 = arith.constant 6 : index
    %c0_35 = arith.constant 0 : index
    %c0_36 = arith.constant 0 : index
    %54 = vector.load %arg4[%c6, %c0_35, %c0_36] : memref<49x4x256xf32, #tpu.memory_space<vmem>>, vector<1x4x256xf32>
    %55 = vector.shape_cast %54 : vector<1x4x256xf32> to vector<4x256xf32>
    %56 = arith.mulf %53, %55 : vector<4x256xf32>
    %57 = arith.addf %47, %56 : vector<4x256xf32>
    %c35_i32 = arith.constant 35 : i32
    %58 = tpu.dynamic_rotate %20 by %c35_i32 dim 1 : vector<4x256xf32>, i32 -> vector<4x256xf32>
    %c7 = arith.constant 7 : index
    %c0_37 = arith.constant 0 : index
    %c0_38 = arith.constant 0 : index
    %59 = vector.load %arg4[%c7, %c0_37, %c0_38] : memref<49x4x256xf32, #tpu.memory_space<vmem>>, vector<1x4x256xf32>
    %60 = vector.shape_cast %59 : vector<1x4x256xf32> to vector<4x256xf32>
    %61 = arith.mulf %58, %60 : vector<4x256xf32>
    %62 = arith.addf %52, %61 : vector<4x256xf32>
    %c34_i32 = arith.constant 34 : i32
    %63 = tpu.dynamic_rotate %20 by %c34_i32 dim 1 : vector<4x256xf32>, i32 -> vector<4x256xf32>
    %c8 = arith.constant 8 : index
    %c0_39 = arith.constant 0 : index
    %c0_40 = arith.constant 0 : index
    %64 = vector.load %arg4[%c8, %c0_39, %c0_40] : memref<49x4x256xf32, #tpu.memory_space<vmem>>, vector<1x4x256xf32>
    %65 = vector.shape_cast %64 : vector<1x4x256xf32> to vector<4x256xf32>
    %66 = arith.mulf %63, %65 : vector<4x256xf32>
    %67 = arith.addf %57, %66 : vector<4x256xf32>
    %c33_i32 = arith.constant 33 : i32
    %68 = tpu.dynamic_rotate %20 by %c33_i32 dim 1 : vector<4x256xf32>, i32 -> vector<4x256xf32>
    %c9 = arith.constant 9 : index
    %c0_41 = arith.constant 0 : index
    %c0_42 = arith.constant 0 : index
    %69 = vector.load %arg4[%c9, %c0_41, %c0_42] : memref<49x4x256xf32, #tpu.memory_space<vmem>>, vector<1x4x256xf32>
    %70 = vector.shape_cast %69 : vector<1x4x256xf32> to vector<4x256xf32>
    %71 = arith.mulf %68, %70 : vector<4x256xf32>
    %72 = arith.addf %62, %71 : vector<4x256xf32>
    %c32_i32 = arith.constant 32 : i32
    %73 = tpu.dynamic_rotate %20 by %c32_i32 dim 1 : vector<4x256xf32>, i32 -> vector<4x256xf32>
    %c10 = arith.constant 10 : index
    %c0_43 = arith.constant 0 : index
    %c0_44 = arith.constant 0 : index
    %74 = vector.load %arg4[%c10, %c0_43, %c0_44] : memref<49x4x256xf32, #tpu.memory_space<vmem>>, vector<1x4x256xf32>
    %75 = vector.shape_cast %74 : vector<1x4x256xf32> to vector<4x256xf32>
    %76 = arith.mulf %73, %75 : vector<4x256xf32>
    %77 = arith.addf %67, %76 : vector<4x256xf32>
    %c31_i32 = arith.constant 31 : i32
    %78 = tpu.dynamic_rotate %20 by %c31_i32 dim 1 : vector<4x256xf32>, i32 -> vector<4x256xf32>
    %c11 = arith.constant 11 : index
    %c0_45 = arith.constant 0 : index
    %c0_46 = arith.constant 0 : index
    %79 = vector.load %arg4[%c11, %c0_45, %c0_46] : memref<49x4x256xf32, #tpu.memory_space<vmem>>, vector<1x4x256xf32>
    %80 = vector.shape_cast %79 : vector<1x4x256xf32> to vector<4x256xf32>
    %81 = arith.mulf %78, %80 : vector<4x256xf32>
    %82 = arith.addf %72, %81 : vector<4x256xf32>
    %c30_i32 = arith.constant 30 : i32
    %83 = tpu.dynamic_rotate %20 by %c30_i32 dim 1 : vector<4x256xf32>, i32 -> vector<4x256xf32>
    %c12 = arith.constant 12 : index
    %c0_47 = arith.constant 0 : index
    %c0_48 = arith.constant 0 : index
    %84 = vector.load %arg4[%c12, %c0_47, %c0_48] : memref<49x4x256xf32, #tpu.memory_space<vmem>>, vector<1x4x256xf32>
    %85 = vector.shape_cast %84 : vector<1x4x256xf32> to vector<4x256xf32>
    %86 = arith.mulf %83, %85 : vector<4x256xf32>
    %87 = arith.addf %77, %86 : vector<4x256xf32>
    %c29_i32 = arith.constant 29 : i32
    %88 = tpu.dynamic_rotate %20 by %c29_i32 dim 1 : vector<4x256xf32>, i32 -> vector<4x256xf32>
    %c13 = arith.constant 13 : index
    %c0_49 = arith.constant 0 : index
    %c0_50 = arith.constant 0 : index
    %89 = vector.load %arg4[%c13, %c0_49, %c0_50] : memref<49x4x256xf32, #tpu.memory_space<vmem>>, vector<1x4x256xf32>
    %90 = vector.shape_cast %89 : vector<1x4x256xf32> to vector<4x256xf32>
    %91 = arith.mulf %88, %90 : vector<4x256xf32>
    %92 = arith.addf %82, %91 : vector<4x256xf32>
    %c19_i32 = arith.constant 19 : i32
    %93 = tpu.dynamic_rotate %20 by %c19_i32 dim 1 : vector<4x256xf32>, i32 -> vector<4x256xf32>
    %c14 = arith.constant 14 : index
    %c0_51 = arith.constant 0 : index
    %c0_52 = arith.constant 0 : index
    %94 = vector.load %arg4[%c14, %c0_51, %c0_52] : memref<49x4x256xf32, #tpu.memory_space<vmem>>, vector<1x4x256xf32>
    %95 = vector.shape_cast %94 : vector<1x4x256xf32> to vector<4x256xf32>
    %96 = arith.mulf %93, %95 : vector<4x256xf32>
    %97 = arith.addf %87, %96 : vector<4x256xf32>
    %c18_i32 = arith.constant 18 : i32
    %98 = tpu.dynamic_rotate %20 by %c18_i32 dim 1 : vector<4x256xf32>, i32 -> vector<4x256xf32>
    %c15 = arith.constant 15 : index
    %c0_53 = arith.constant 0 : index
    %c0_54 = arith.constant 0 : index
    %99 = vector.load %arg4[%c15, %c0_53, %c0_54] : memref<49x4x256xf32, #tpu.memory_space<vmem>>, vector<1x4x256xf32>
    %100 = vector.shape_cast %99 : vector<1x4x256xf32> to vector<4x256xf32>
    %101 = arith.mulf %98, %100 : vector<4x256xf32>
    %102 = arith.addf %92, %101 : vector<4x256xf32>
    %c17_i32 = arith.constant 17 : i32
    %103 = tpu.dynamic_rotate %20 by %c17_i32 dim 1 : vector<4x256xf32>, i32 -> vector<4x256xf32>
    %c16 = arith.constant 16 : index
    %c0_55 = arith.constant 0 : index
    %c0_56 = arith.constant 0 : index
    %104 = vector.load %arg4[%c16, %c0_55, %c0_56] : memref<49x4x256xf32, #tpu.memory_space<vmem>>, vector<1x4x256xf32>
    %105 = vector.shape_cast %104 : vector<1x4x256xf32> to vector<4x256xf32>
    %106 = arith.mulf %103, %105 : vector<4x256xf32>
    %107 = arith.addf %97, %106 : vector<4x256xf32>
    %c16_i32 = arith.constant 16 : i32
    %108 = tpu.dynamic_rotate %20 by %c16_i32 dim 1 : vector<4x256xf32>, i32 -> vector<4x256xf32>
    %c17 = arith.constant 17 : index
    %c0_57 = arith.constant 0 : index
    %c0_58 = arith.constant 0 : index
    %109 = vector.load %arg4[%c17, %c0_57, %c0_58] : memref<49x4x256xf32, #tpu.memory_space<vmem>>, vector<1x4x256xf32>
    %110 = vector.shape_cast %109 : vector<1x4x256xf32> to vector<4x256xf32>
    %111 = arith.mulf %108, %110 : vector<4x256xf32>
    %112 = arith.addf %102, %111 : vector<4x256xf32>
    %c15_i32 = arith.constant 15 : i32
    %113 = tpu.dynamic_rotate %20 by %c15_i32 dim 1 : vector<4x256xf32>, i32 -> vector<4x256xf32>
    %c18 = arith.constant 18 : index
    %c0_59 = arith.constant 0 : index
    %c0_60 = arith.constant 0 : index
    %114 = vector.load %arg4[%c18, %c0_59, %c0_60] : memref<49x4x256xf32, #tpu.memory_space<vmem>>, vector<1x4x256xf32>
    %115 = vector.shape_cast %114 : vector<1x4x256xf32> to vector<4x256xf32>
    %116 = arith.mulf %113, %115 : vector<4x256xf32>
    %117 = arith.addf %107, %116 : vector<4x256xf32>
    %c14_i32 = arith.constant 14 : i32
    %118 = tpu.dynamic_rotate %20 by %c14_i32 dim 1 : vector<4x256xf32>, i32 -> vector<4x256xf32>
    %c19 = arith.constant 19 : index
    %c0_61 = arith.constant 0 : index
    %c0_62 = arith.constant 0 : index
    %119 = vector.load %arg4[%c19, %c0_61, %c0_62] : memref<49x4x256xf32, #tpu.memory_space<vmem>>, vector<1x4x256xf32>
    %120 = vector.shape_cast %119 : vector<1x4x256xf32> to vector<4x256xf32>
    %121 = arith.mulf %118, %120 : vector<4x256xf32>
    %122 = arith.addf %112, %121 : vector<4x256xf32>
    %c13_i32 = arith.constant 13 : i32
    %123 = tpu.dynamic_rotate %20 by %c13_i32 dim 1 : vector<4x256xf32>, i32 -> vector<4x256xf32>
    %c20 = arith.constant 20 : index
    %c0_63 = arith.constant 0 : index
    %c0_64 = arith.constant 0 : index
    %124 = vector.load %arg4[%c20, %c0_63, %c0_64] : memref<49x4x256xf32, #tpu.memory_space<vmem>>, vector<1x4x256xf32>
    %125 = vector.shape_cast %124 : vector<1x4x256xf32> to vector<4x256xf32>
    %126 = arith.mulf %123, %125 : vector<4x256xf32>
    %127 = arith.addf %117, %126 : vector<4x256xf32>
    %c3_i32 = arith.constant 3 : i32
    %128 = tpu.dynamic_rotate %20 by %c3_i32 dim 1 : vector<4x256xf32>, i32 -> vector<4x256xf32>
    %c21 = arith.constant 21 : index
    %c0_65 = arith.constant 0 : index
    %c0_66 = arith.constant 0 : index
    %129 = vector.load %arg4[%c21, %c0_65, %c0_66] : memref<49x4x256xf32, #tpu.memory_space<vmem>>, vector<1x4x256xf32>
    %130 = vector.shape_cast %129 : vector<1x4x256xf32> to vector<4x256xf32>
    %131 = arith.mulf %128, %130 : vector<4x256xf32>
    %132 = arith.addf %122, %131 : vector<4x256xf32>
    %c2_i32 = arith.constant 2 : i32
    %133 = tpu.dynamic_rotate %20 by %c2_i32 dim 1 : vector<4x256xf32>, i32 -> vector<4x256xf32>
    %c22 = arith.constant 22 : index
    %c0_67 = arith.constant 0 : index
    %c0_68 = arith.constant 0 : index
    %134 = vector.load %arg4[%c22, %c0_67, %c0_68] : memref<49x4x256xf32, #tpu.memory_space<vmem>>, vector<1x4x256xf32>
    %135 = vector.shape_cast %134 : vector<1x4x256xf32> to vector<4x256xf32>
    %136 = arith.mulf %133, %135 : vector<4x256xf32>
    %137 = arith.addf %127, %136 : vector<4x256xf32>
    %c1_i32 = arith.constant 1 : i32
    %138 = tpu.dynamic_rotate %20 by %c1_i32 dim 1 : vector<4x256xf32>, i32 -> vector<4x256xf32>
    %c23 = arith.constant 23 : index
    %c0_69 = arith.constant 0 : index
    %c0_70 = arith.constant 0 : index
    %139 = vector.load %arg4[%c23, %c0_69, %c0_70] : memref<49x4x256xf32, #tpu.memory_space<vmem>>, vector<1x4x256xf32>
    %140 = vector.shape_cast %139 : vector<1x4x256xf32> to vector<4x256xf32>
    %141 = arith.mulf %138, %140 : vector<4x256xf32>
    %142 = arith.addf %132, %141 : vector<4x256xf32>
    %c24 = arith.constant 24 : index
    %c0_71 = arith.constant 0 : index
    %c0_72 = arith.constant 0 : index
    %143 = vector.load %arg4[%c24, %c0_71, %c0_72] : memref<49x4x256xf32, #tpu.memory_space<vmem>>, vector<1x4x256xf32>
    %144 = vector.shape_cast %143 : vector<1x4x256xf32> to vector<4x256xf32>
    %145 = arith.mulf %20, %144 : vector<4x256xf32>
    %146 = arith.addf %137, %145 : vector<4x256xf32>
    %c255_i32 = arith.constant 255 : i32
    %147 = tpu.dynamic_rotate %20 by %c255_i32 dim 1 : vector<4x256xf32>, i32 -> vector<4x256xf32>
    %c25 = arith.constant 25 : index
    %c0_73 = arith.constant 0 : index
    %c0_74 = arith.constant 0 : index
    %148 = vector.load %arg4[%c25, %c0_73, %c0_74] : memref<49x4x256xf32, #tpu.memory_space<vmem>>, vector<1x4x256xf32>
    %149 = vector.shape_cast %148 : vector<1x4x256xf32> to vector<4x256xf32>
    %150 = arith.mulf %147, %149 : vector<4x256xf32>
    %151 = arith.addf %142, %150 : vector<4x256xf32>
    %c254_i32 = arith.constant 254 : i32
    %152 = tpu.dynamic_rotate %20 by %c254_i32 dim 1 : vector<4x256xf32>, i32 -> vector<4x256xf32>
    %c26 = arith.constant 26 : index
    %c0_75 = arith.constant 0 : index
    %c0_76 = arith.constant 0 : index
    %153 = vector.load %arg4[%c26, %c0_75, %c0_76] : memref<49x4x256xf32, #tpu.memory_space<vmem>>, vector<1x4x256xf32>
    %154 = vector.shape_cast %153 : vector<1x4x256xf32> to vector<4x256xf32>
    %155 = arith.mulf %152, %154 : vector<4x256xf32>
    %156 = arith.addf %146, %155 : vector<4x256xf32>
    %c253_i32 = arith.constant 253 : i32
    %157 = tpu.dynamic_rotate %20 by %c253_i32 dim 1 : vector<4x256xf32>, i32 -> vector<4x256xf32>
    %c27 = arith.constant 27 : index
    %c0_77 = arith.constant 0 : index
    %c0_78 = arith.constant 0 : index
    %158 = vector.load %arg4[%c27, %c0_77, %c0_78] : memref<49x4x256xf32, #tpu.memory_space<vmem>>, vector<1x4x256xf32>
    %159 = vector.shape_cast %158 : vector<1x4x256xf32> to vector<4x256xf32>
    %160 = arith.mulf %157, %159 : vector<4x256xf32>
    %161 = arith.addf %151, %160 : vector<4x256xf32>
    %c243_i32 = arith.constant 243 : i32
    %162 = tpu.dynamic_rotate %20 by %c243_i32 dim 1 : vector<4x256xf32>, i32 -> vector<4x256xf32>
    %c28 = arith.constant 28 : index
    %c0_79 = arith.constant 0 : index
    %c0_80 = arith.constant 0 : index
    %163 = vector.load %arg4[%c28, %c0_79, %c0_80] : memref<49x4x256xf32, #tpu.memory_space<vmem>>, vector<1x4x256xf32>
    %164 = vector.shape_cast %163 : vector<1x4x256xf32> to vector<4x256xf32>
    %165 = arith.mulf %162, %164 : vector<4x256xf32>
    %166 = arith.addf %156, %165 : vector<4x256xf32>
    %c242_i32 = arith.constant 242 : i32
    %167 = tpu.dynamic_rotate %20 by %c242_i32 dim 1 : vector<4x256xf32>, i32 -> vector<4x256xf32>
    %c29 = arith.constant 29 : index
    %c0_81 = arith.constant 0 : index
    %c0_82 = arith.constant 0 : index
    %168 = vector.load %arg4[%c29, %c0_81, %c0_82] : memref<49x4x256xf32, #tpu.memory_space<vmem>>, vector<1x4x256xf32>
    %169 = vector.shape_cast %168 : vector<1x4x256xf32> to vector<4x256xf32>
    %170 = arith.mulf %167, %169 : vector<4x256xf32>
    %171 = arith.addf %161, %170 : vector<4x256xf32>
    %c241_i32 = arith.constant 241 : i32
    %172 = tpu.dynamic_rotate %20 by %c241_i32 dim 1 : vector<4x256xf32>, i32 -> vector<4x256xf32>
    %c30 = arith.constant 30 : index
    %c0_83 = arith.constant 0 : index
    %c0_84 = arith.constant 0 : index
    %173 = vector.load %arg4[%c30, %c0_83, %c0_84] : memref<49x4x256xf32, #tpu.memory_space<vmem>>, vector<1x4x256xf32>
    %174 = vector.shape_cast %173 : vector<1x4x256xf32> to vector<4x256xf32>
    %175 = arith.mulf %172, %174 : vector<4x256xf32>
    %176 = arith.addf %166, %175 : vector<4x256xf32>
    %c240_i32 = arith.constant 240 : i32
    %177 = tpu.dynamic_rotate %20 by %c240_i32 dim 1 : vector<4x256xf32>, i32 -> vector<4x256xf32>
    %c31 = arith.constant 31 : index
    %c0_85 = arith.constant 0 : index
    %c0_86 = arith.constant 0 : index
    %178 = vector.load %arg4[%c31, %c0_85, %c0_86] : memref<49x4x256xf32, #tpu.memory_space<vmem>>, vector<1x4x256xf32>
    %179 = vector.shape_cast %178 : vector<1x4x256xf32> to vector<4x256xf32>
    %180 = arith.mulf %177, %179 : vector<4x256xf32>
    %181 = arith.addf %171, %180 : vector<4x256xf32>
    %c239_i32 = arith.constant 239 : i32
    %182 = tpu.dynamic_rotate %20 by %c239_i32 dim 1 : vector<4x256xf32>, i32 -> vector<4x256xf32>
    %c32 = arith.constant 32 : index
    %c0_87 = arith.constant 0 : index
    %c0_88 = arith.constant 0 : index
    %183 = vector.load %arg4[%c32, %c0_87, %c0_88] : memref<49x4x256xf32, #tpu.memory_space<vmem>>, vector<1x4x256xf32>
    %184 = vector.shape_cast %183 : vector<1x4x256xf32> to vector<4x256xf32>
    %185 = arith.mulf %182, %184 : vector<4x256xf32>
    %186 = arith.addf %176, %185 : vector<4x256xf32>
    %c238_i32 = arith.constant 238 : i32
    %187 = tpu.dynamic_rotate %20 by %c238_i32 dim 1 : vector<4x256xf32>, i32 -> vector<4x256xf32>
    %c33 = arith.constant 33 : index
    %c0_89 = arith.constant 0 : index
    %c0_90 = arith.constant 0 : index
    %188 = vector.load %arg4[%c33, %c0_89, %c0_90] : memref<49x4x256xf32, #tpu.memory_space<vmem>>, vector<1x4x256xf32>
    %189 = vector.shape_cast %188 : vector<1x4x256xf32> to vector<4x256xf32>
    %190 = arith.mulf %187, %189 : vector<4x256xf32>
    %191 = arith.addf %181, %190 : vector<4x256xf32>
    %c237_i32 = arith.constant 237 : i32
    %192 = tpu.dynamic_rotate %20 by %c237_i32 dim 1 : vector<4x256xf32>, i32 -> vector<4x256xf32>
    %c34 = arith.constant 34 : index
    %c0_91 = arith.constant 0 : index
    %c0_92 = arith.constant 0 : index
    %193 = vector.load %arg4[%c34, %c0_91, %c0_92] : memref<49x4x256xf32, #tpu.memory_space<vmem>>, vector<1x4x256xf32>
    %194 = vector.shape_cast %193 : vector<1x4x256xf32> to vector<4x256xf32>
    %195 = arith.mulf %192, %194 : vector<4x256xf32>
    %196 = arith.addf %186, %195 : vector<4x256xf32>
    %c227_i32 = arith.constant 227 : i32
    %197 = tpu.dynamic_rotate %20 by %c227_i32 dim 1 : vector<4x256xf32>, i32 -> vector<4x256xf32>
    %c35 = arith.constant 35 : index
    %c0_93 = arith.constant 0 : index
    %c0_94 = arith.constant 0 : index
    %198 = vector.load %arg4[%c35, %c0_93, %c0_94] : memref<49x4x256xf32, #tpu.memory_space<vmem>>, vector<1x4x256xf32>
    %199 = vector.shape_cast %198 : vector<1x4x256xf32> to vector<4x256xf32>
    %200 = arith.mulf %197, %199 : vector<4x256xf32>
    %201 = arith.addf %191, %200 : vector<4x256xf32>
    %c226_i32 = arith.constant 226 : i32
    %202 = tpu.dynamic_rotate %20 by %c226_i32 dim 1 : vector<4x256xf32>, i32 -> vector<4x256xf32>
    %c36 = arith.constant 36 : index
    %c0_95 = arith.constant 0 : index
    %c0_96 = arith.constant 0 : index
    %203 = vector.load %arg4[%c36, %c0_95, %c0_96] : memref<49x4x256xf32, #tpu.memory_space<vmem>>, vector<1x4x256xf32>
    %204 = vector.shape_cast %203 : vector<1x4x256xf32> to vector<4x256xf32>
    %205 = arith.mulf %202, %204 : vector<4x256xf32>
    %206 = arith.addf %196, %205 : vector<4x256xf32>
    %c225_i32 = arith.constant 225 : i32
    %207 = tpu.dynamic_rotate %20 by %c225_i32 dim 1 : vector<4x256xf32>, i32 -> vector<4x256xf32>
    %c37 = arith.constant 37 : index
    %c0_97 = arith.constant 0 : index
    %c0_98 = arith.constant 0 : index
    %208 = vector.load %arg4[%c37, %c0_97, %c0_98] : memref<49x4x256xf32, #tpu.memory_space<vmem>>, vector<1x4x256xf32>
    %209 = vector.shape_cast %208 : vector<1x4x256xf32> to vector<4x256xf32>
    %210 = arith.mulf %207, %209 : vector<4x256xf32>
    %211 = arith.addf %201, %210 : vector<4x256xf32>
    %c224_i32 = arith.constant 224 : i32
    %212 = tpu.dynamic_rotate %20 by %c224_i32 dim 1 : vector<4x256xf32>, i32 -> vector<4x256xf32>
    %c38 = arith.constant 38 : index
    %c0_99 = arith.constant 0 : index
    %c0_100 = arith.constant 0 : index
    %213 = vector.load %arg4[%c38, %c0_99, %c0_100] : memref<49x4x256xf32, #tpu.memory_space<vmem>>, vector<1x4x256xf32>
    %214 = vector.shape_cast %213 : vector<1x4x256xf32> to vector<4x256xf32>
    %215 = arith.mulf %212, %214 : vector<4x256xf32>
    %216 = arith.addf %206, %215 : vector<4x256xf32>
    %c223_i32 = arith.constant 223 : i32
    %217 = tpu.dynamic_rotate %20 by %c223_i32 dim 1 : vector<4x256xf32>, i32 -> vector<4x256xf32>
    %c39 = arith.constant 39 : index
    %c0_101 = arith.constant 0 : index
    %c0_102 = arith.constant 0 : index
    %218 = vector.load %arg4[%c39, %c0_101, %c0_102] : memref<49x4x256xf32, #tpu.memory_space<vmem>>, vector<1x4x256xf32>
    %219 = vector.shape_cast %218 : vector<1x4x256xf32> to vector<4x256xf32>
    %220 = arith.mulf %217, %219 : vector<4x256xf32>
    %221 = arith.addf %211, %220 : vector<4x256xf32>
    %c222_i32 = arith.constant 222 : i32
    %222 = tpu.dynamic_rotate %20 by %c222_i32 dim 1 : vector<4x256xf32>, i32 -> vector<4x256xf32>
    %c40 = arith.constant 40 : index
    %c0_103 = arith.constant 0 : index
    %c0_104 = arith.constant 0 : index
    %223 = vector.load %arg4[%c40, %c0_103, %c0_104] : memref<49x4x256xf32, #tpu.memory_space<vmem>>, vector<1x4x256xf32>
    %224 = vector.shape_cast %223 : vector<1x4x256xf32> to vector<4x256xf32>
    %225 = arith.mulf %222, %224 : vector<4x256xf32>
    %226 = arith.addf %216, %225 : vector<4x256xf32>
    %c221_i32 = arith.constant 221 : i32
    %227 = tpu.dynamic_rotate %20 by %c221_i32 dim 1 : vector<4x256xf32>, i32 -> vector<4x256xf32>
    %c41 = arith.constant 41 : index
    %c0_105 = arith.constant 0 : index
    %c0_106 = arith.constant 0 : index
    %228 = vector.load %arg4[%c41, %c0_105, %c0_106] : memref<49x4x256xf32, #tpu.memory_space<vmem>>, vector<1x4x256xf32>
    %229 = vector.shape_cast %228 : vector<1x4x256xf32> to vector<4x256xf32>
    %230 = arith.mulf %227, %229 : vector<4x256xf32>
    %231 = arith.addf %221, %230 : vector<4x256xf32>
    %c211_i32 = arith.constant 211 : i32
    %232 = tpu.dynamic_rotate %20 by %c211_i32 dim 1 : vector<4x256xf32>, i32 -> vector<4x256xf32>
    %c42 = arith.constant 42 : index
    %c0_107 = arith.constant 0 : index
    %c0_108 = arith.constant 0 : index
    %233 = vector.load %arg4[%c42, %c0_107, %c0_108] : memref<49x4x256xf32, #tpu.memory_space<vmem>>, vector<1x4x256xf32>
    %234 = vector.shape_cast %233 : vector<1x4x256xf32> to vector<4x256xf32>
    %235 = arith.mulf %232, %234 : vector<4x256xf32>
    %236 = arith.addf %226, %235 : vector<4x256xf32>
    %c210_i32 = arith.constant 210 : i32
    %237 = tpu.dynamic_rotate %20 by %c210_i32 dim 1 : vector<4x256xf32>, i32 -> vector<4x256xf32>
    %c43 = arith.constant 43 : index
    %c0_109 = arith.constant 0 : index
    %c0_110 = arith.constant 0 : index
    %238 = vector.load %arg4[%c43, %c0_109, %c0_110] : memref<49x4x256xf32, #tpu.memory_space<vmem>>, vector<1x4x256xf32>
    %239 = vector.shape_cast %238 : vector<1x4x256xf32> to vector<4x256xf32>
    %240 = arith.mulf %237, %239 : vector<4x256xf32>
    %241 = arith.addf %231, %240 : vector<4x256xf32>
    %c209_i32 = arith.constant 209 : i32
    %242 = tpu.dynamic_rotate %20 by %c209_i32 dim 1 : vector<4x256xf32>, i32 -> vector<4x256xf32>
    %c44 = arith.constant 44 : index
    %c0_111 = arith.constant 0 : index
    %c0_112 = arith.constant 0 : index
    %243 = vector.load %arg4[%c44, %c0_111, %c0_112] : memref<49x4x256xf32, #tpu.memory_space<vmem>>, vector<1x4x256xf32>
    %244 = vector.shape_cast %243 : vector<1x4x256xf32> to vector<4x256xf32>
    %245 = arith.mulf %242, %244 : vector<4x256xf32>
    %246 = arith.addf %236, %245 : vector<4x256xf32>
    %c208_i32 = arith.constant 208 : i32
    %247 = tpu.dynamic_rotate %20 by %c208_i32 dim 1 : vector<4x256xf32>, i32 -> vector<4x256xf32>
    %c45 = arith.constant 45 : index
    %c0_113 = arith.constant 0 : index
    %c0_114 = arith.constant 0 : index
    %248 = vector.load %arg4[%c45, %c0_113, %c0_114] : memref<49x4x256xf32, #tpu.memory_space<vmem>>, vector<1x4x256xf32>
    %249 = vector.shape_cast %248 : vector<1x4x256xf32> to vector<4x256xf32>
    %250 = arith.mulf %247, %249 : vector<4x256xf32>
    %251 = arith.addf %241, %250 : vector<4x256xf32>
    %c207_i32 = arith.constant 207 : i32
    %252 = tpu.dynamic_rotate %20 by %c207_i32 dim 1 : vector<4x256xf32>, i32 -> vector<4x256xf32>
    %c46 = arith.constant 46 : index
    %c0_115 = arith.constant 0 : index
    %c0_116 = arith.constant 0 : index
    %253 = vector.load %arg4[%c46, %c0_115, %c0_116] : memref<49x4x256xf32, #tpu.memory_space<vmem>>, vector<1x4x256xf32>
    %254 = vector.shape_cast %253 : vector<1x4x256xf32> to vector<4x256xf32>
    %255 = arith.mulf %252, %254 : vector<4x256xf32>
    %256 = arith.addf %246, %255 : vector<4x256xf32>
    %c206_i32 = arith.constant 206 : i32
    %257 = tpu.dynamic_rotate %20 by %c206_i32 dim 1 : vector<4x256xf32>, i32 -> vector<4x256xf32>
    %c47 = arith.constant 47 : index
    %c0_117 = arith.constant 0 : index
    %c0_118 = arith.constant 0 : index
    %258 = vector.load %arg4[%c47, %c0_117, %c0_118] : memref<49x4x256xf32, #tpu.memory_space<vmem>>, vector<1x4x256xf32>
    %259 = vector.shape_cast %258 : vector<1x4x256xf32> to vector<4x256xf32>
    %260 = arith.mulf %257, %259 : vector<4x256xf32>
    %261 = arith.addf %251, %260 : vector<4x256xf32>
    %c205_i32 = arith.constant 205 : i32
    %262 = tpu.dynamic_rotate %20 by %c205_i32 dim 1 : vector<4x256xf32>, i32 -> vector<4x256xf32>
    %c48 = arith.constant 48 : index
    %c0_119 = arith.constant 0 : index
    %c0_120 = arith.constant 0 : index
    %263 = vector.load %arg4[%c48, %c0_119, %c0_120] : memref<49x4x256xf32, #tpu.memory_space<vmem>>, vector<1x4x256xf32>
    %264 = vector.shape_cast %263 : vector<1x4x256xf32> to vector<4x256xf32>
    %265 = arith.mulf %262, %264 : vector<4x256xf32>
    %266 = arith.addf %256, %265 : vector<4x256xf32>
    %267 = arith.addf %266, %261 : vector<4x256xf32>
    %c0_121 = arith.constant 0 : index
    %268 = memref.load %arg5[%c0_121] : memref<1xf32, #tpu.memory_space<smem>>
    %269 = vector.extract_strided_slice %267 {offsets = [0, 0], sizes = [1, 256], strides = [1, 1]} : vector<4x256xf32> to vector<1x256xf32>
    %270 = vector.extract_strided_slice %267 {offsets = [1, 0], sizes = [1, 256], strides = [1, 1]} : vector<4x256xf32> to vector<1x256xf32>
    %271 = arith.addf %269, %270 : vector<1x256xf32>
    %272 = vector.broadcast %268 : f32 to vector<1x256xf32>
    %273 = arith.addf %271, %272 : vector<1x256xf32>
    %cst_122 = arith.constant 0.000000e+00 : f32
    %274 = vector.broadcast %cst_122 : f32 to vector<1x256xf32>
    %275 = arith.maximumf %273, %274 : vector<1x256xf32>
    %276 = vector.extract_strided_slice %267 {offsets = [2, 0], sizes = [1, 256], strides = [1, 1]} : vector<4x256xf32> to vector<1x256xf32>
    %277 = vector.extract_strided_slice %267 {offsets = [3, 0], sizes = [1, 256], strides = [1, 1]} : vector<4x256xf32> to vector<1x256xf32>
    %278 = arith.addf %276, %277 : vector<1x256xf32>
    %279 = vector.broadcast %268 : f32 to vector<1x256xf32>
    %280 = arith.addf %278, %279 : vector<1x256xf32>
    %cst_123 = arith.constant 0.000000e+00 : f32
    %281 = vector.broadcast %cst_123 : f32 to vector<1x256xf32>
    %282 = arith.maximumf %280, %281 : vector<1x256xf32>
    %cst_124 = arith.constant 0.000000e+00 : f32
    %283 = vector.broadcast %cst_124 : f32 to vector<1x256xf32>
    %284 = arith.subf %283, %275 : vector<1x256xf32>
    %285 = math.exp %284 : vector<1x256xf32>
    %cst_125 = arith.constant 1.000000e+00 : f32
    %286 = vector.broadcast %cst_125 : f32 to vector<1x256xf32>
    %287 = arith.addf %286, %285 : vector<1x256xf32>
    %288 = tpu.reciprocal %287 {approx = true} : vector<1x256xf32> -> vector<1x256xf32>
    %cst_126 = arith.constant 0.000000e+00 : f32
    %289 = vector.broadcast %cst_126 : f32 to vector<1x256xf32>
    %290 = arith.subf %289, %282 : vector<1x256xf32>
    %291 = math.exp %290 : vector<1x256xf32>
    %cst_127 = arith.constant 1.000000e+00 : f32
    %292 = vector.broadcast %cst_127 : f32 to vector<1x256xf32>
    %293 = arith.addf %292, %291 : vector<1x256xf32>
    %294 = tpu.reciprocal %293 {approx = true} : vector<1x256xf32> -> vector<1x256xf32>
    %295 = vector.broadcast %288 : vector<1x256xf32> to vector<8x256xf32>
    %296 = arith.mulf %295, %8 : vector<8x256xf32>
    %c0_128 = arith.constant 0 : index
    %c0_129 = arith.constant 0 : index
    %c0_130 = arith.constant 0 : index
    %297 = vector.load %arg6[%c0_128, %c0_129, %c0_130] : memref<1x8x256xf32, #tpu.memory_space<vmem>>, vector<1x8x256xf32>
    %298 = vector.shape_cast %297 : vector<1x8x256xf32> to vector<8x256xf32>
    %299 = vector.shape_cast %296 : vector<8x256xf32> to vector<1x8x256xf32>
    tpu.vector_store %arg6[%c0_128, %c0_129, %c0_130], %299 {strides = array<i32>} : memref<1x8x256xf32, #tpu.memory_space<vmem>>, vector<1x8x256xf32>,
    %300 = arith.subf %1, %8 : vector<8x256xf32>
    %301 = vector.broadcast %294 : vector<1x256xf32> to vector<8x256xf32>
    %302 = arith.mulf %301, %300 : vector<8x256xf32>
    %c0_131 = arith.constant 0 : index
    %c0_132 = arith.constant 0 : index
    %c0_133 = arith.constant 0 : index
    %303 = vector.load %arg7[%c0_131, %c0_132, %c0_133] : memref<1x8x256xf32, #tpu.memory_space<vmem>>, vector<1x8x256xf32>
    %304 = vector.shape_cast %303 : vector<1x8x256xf32> to vector<8x256xf32>
    %305 = vector.shape_cast %302 : vector<8x256xf32> to vector<1x8x256xf32>
    tpu.vector_store %arg7[%c0_131, %c0_132, %c0_133], %305 {strides = array<i32>} : memref<1x8x256xf32, #tpu.memory_space<vmem>>, vector<1x8x256xf32>,
    return
  }
  func.func @transform_0(%arg0: i32) -> (i32, i32, i32) {
    %c0_i32 = arith.constant 0 : i32
    %c0_i32_0 = arith.constant 0 : i32
    %c0_i32_1 = arith.constant 0 : i32
    return %arg0, %c0_i32, %c0_i32_0 : i32, i32, i32
  }
  func.func @transform_1(%arg0: i32) -> (i32, i32, i32) {
    %c0_i32 = arith.constant 0 : i32
    %c0_i32_0 = arith.constant 0 : i32
    %c0_i32_1 = arith.constant 0 : i32
    return %arg0, %c0_i32, %c0_i32_0 : i32, i32, i32
  }
  func.func @transform_2(%arg0: i32) -> (i32, i32, i32) {
    %c0_i32 = arith.constant 0 : i32
    %c0_i32_0 = arith.constant 0 : i32
    %c0_i32_1 = arith.constant 0 : i32
    return %arg0, %c0_i32, %c0_i32_0 : i32, i32, i32
  }
  func.func @transform_3(%arg0: i32) -> (i32, i32, i32) {
    %c0_i32 = arith.constant 0 : i32
    %c0_i32_0 = arith.constant 0 : i32
    %c0_i32_1 = arith.constant 0 : i32
    %c0_i32_2 = arith.constant 0 : i32
    return %c0_i32, %c0_i32_0, %c0_i32_1 : i32, i32, i32
  }
  func.func @transform_4(%arg0: i32) -> i32 {
    %c0_i32 = arith.constant 0 : i32
    %c0_i32_0 = arith.constant 0 : i32
    return %c0_i32 : i32
  }
  func.func @transform_5(%arg0: i32) -> (i32, i32, i32) {
    %c0_i32 = arith.constant 0 : i32
    %c0_i32_0 = arith.constant 0 : i32
    %c0_i32_1 = arith.constant 0 : i32
    return %arg0, %c0_i32, %c0_i32_0 : i32, i32, i32
  }
  func.func @transform_6(%arg0: i32) -> (i32, i32, i32) {
    %c0_i32 = arith.constant 0 : i32
    %c0_i32_0 = arith.constant 0 : i32
    %c0_i32_1 = arith.constant 0 : i32
    return %arg0, %c0_i32, %c0_i32_0 : i32, i32, i32
  }
}

</mosaic_0001>

<bundles_post_ra>
// kernel: tpu_custom_call.1
= control target key start
LH: loop header
LB: loop body
LE: loop exit
PB: predicated region body
PF: predicated region fallthrough
CT: control target
= control target key end

     0   :  { %s2906_s0 = inlined_call_operand.hbm [shape: f32[2,8,1], index: 0, kind: input, shape index: {}]   ;;  %s2907_s1 = inlined_call_operand.hbm [shape: f32[2,8,8], index: 1, kind: input, shape index: {}]   ;;  %s2908_s2 = inlined_call_operand.hbm [shape: f32[2,8,256], index: 2, kind: input, shape index: {}]   ;;  %s2909_s3 = inlined_call_operand.hbm [shape: f32[49,4,256], index: 3, kind: input, shape index: {}]   ;;  %s2910_s4 = inlined_call_operand.<no memory space> [shape: f32[1], index: 4, kind: input, shape index: {}]   ;;  %s2911_s5 = inlined_call_operand.hbm [shape: f32[2,8,256], index: 5, kind: output, shape index: {0}]   ;;  %s2912_s6 = inlined_call_operand.hbm [shape: f32[2,8,256], index: 6, kind: output, shape index: {1}]  }
   0x1   :  { %2932 = sst [smem:[#allocation29_spill]] %s2907_s1 }
   0x2   :  { %12 = sst [smem:[#allocation3]] %s2910_s4 }
   0x3   :  { %13 = vsyncpa [#allocation5], 0 }
   0x4   :  { %15 = vsyncpa [#allocation5 + $0x1], 0 }
   0x5   :  { %16 = vsyncpa [#allocation8], 0 }
   0x6   :  { %18 = vsyncpa [#allocation8 + $0x1], 0 }
   0x7   :  { %19 = vsyncpa [#allocation11], 0 }
   0x8   :  { %20 = vsyncpa [#allocation6], 0 }
   0x9   :  { %22 = vsyncpa [#allocation6 + $0x1], 0 }
   0xa   :  { %23 = vsyncpa [#allocation14], 0 }
   0xb   :  { %25 = vsyncpa [#allocation14 + $0x1], 0  ;;  %s2108_s23 = smov 0   ;;  %s2110_s24 = smov 0  }
   0xc   :  { %s2112_s25 = smov 0   ;;  %s2114_s26 = smov 0  }
   0xd LB: > { %2933 = sst [smem:[#allocation20_spill]] %s2005_s25  ;;  %s2129_s4 = sadd.s32 1, %s2009_s26   ;;  %s2009_s26 = sphi %s2114_s26, %s2969_s26   ;;  %s2005_s25 = sphi %s2112_s25, %s2971_s25   ;;  %s2001_s24 = sphi %s2110_s24, %s2973_s24   ;;  %s1997_s23 = sphi %s2108_s23, %s2972_s23  }
   0xe   : > { %2934 = sst [smem:[#allocation21_spill]] %s2129_s4  ;;  %s38_s27 = sadd.s32 1, %s2005_s25 }
   0xf   : > { %s35_s28 = ssub.s32 %s2009_s26, %s2129_s4  ;;  %p2913_p0 = scmp.ne.s32.totalorder %s2005_s25, %s2001_s24 }
  0x10   : > { %p36_p1 = scmp.eq.s32.totalorder %s35_s28, 0  ;;  %p46_p2 = scmp.eq.s32.totalorder %s2009_s26, 0 }
  0x11   : > { %p1638_p4 = scmp.lt.s32.totalorder %s2009_s26, 2  ;;  %s2146_s30 = sand.u32 1, %s2005_s25  }
  0x12   : > { %s2140_s29 = scalar_select %p36_p1, %s2005_s25, %s38_s27  }
  0x13   : > { %p47_p5 = por %p46_p2, %p2913_p0  ;;  %s1576_s7 = sshll.u32 %s2146_s30, 3 }
  0x14   : > { %2935 = sst [smem:[#allocation22_spill]] %s2140_s29  ;;  %s1577_s8 = sshll.u32 %s2009_s26, 7 }
  0x15   : > { %p2150_p6 = pnand %p1638_p4, %p47_p5  ;;  %s255_s10 = sand.u32 1, %s2009_s26  }
  0x16   : > { %s2937_s1 = sld [smem:[#allocation29_spill]]  ;;  %s259_s14 = scalar_lea.vmem [#allocation7], %s1576_s7 }
  0x17   : > { %s2936_s9 = scalar_select %p2150_p6, 1, 0 }
  0x18   : > { %s266_s15 = sshll.u32 %s259_s14, 4  ;;  %s2166_s16 = scalar_lea.sflag [#allocation8], %s255_s10  ;;  %s2164_s15 = int_to_ptr.vmem [resolvable:$true] %s266_s15 }
  0x19   : > { %p2172_p8 = pneg %p2150_p6 }
  0x1b   : > { %s2938_s18 = scalar_select %p2172_p8, 1, 0 }
  0x1c   : > { %s2160_s13 = scalar_lea.hbm %s2937_s1, %s1577_s8  ;;  %s1790_s21 = scalar_lea.hbm %s2937_s1, 256 }
  0x1d   : > { %s1785_s17 = scalar_lea.hbm %s2160_s13, 128  ;;  %p1791_p11 = scmp.lt.u32.totalorder %s2160_s13, %s2937_s1 }
  0x1e   : > { %p1786_p7 = scmp.ne.s32.totalorder %s2160_s13, %s1785_s17  ;;  %p1792_p12 = scmp.lt.u32.totalorder %s1790_s21, %s1785_s17 }
  0x1f   : > { %p1794_p1 = scmp.lt.u32.totalorder %s1785_s17, %s2160_s13 }
  0x20   : > { %p1788_p9 = pnand %p2172_p8, %p1786_p7  ;;  %p1793_p13 = por %p1792_p12, %p1791_p11 }
  0x22   : > { %p1789_p10 = pneg %p1788_p9  ;;  %p1795_p2 = por %p1794_p1, %p1793_p13 }
  0x24   : > { %p1796_p4 = pnand %p1795_p2, %p1789_p10 }
  0x26   : > { %1799 = shalt.err (!%p1796_p4)
}
  0x27   : > { %s1800_s28 = scalar_lea.vmem %s2164_s15, 128  ;;  %s2011_s10 = smov [#allocation7]  }
  0x28   : > { %p1801_p5 = scmp.ne.s32.totalorder %s2164_s15, %s1800_s28  ;;  %s1805_s11 = sshll.u32 %s2011_s10, 4  ;;  %s1806_s11 = int_to_ptr.vmem [resolvable:$false] %s1805_s11 }
  0x29   : > { %s1807_s12 = scalar_lea.vmem %s1806_s11, 256  ;;  %p1808_p3 = scmp.lt.s32.totalorder %s2164_s15, %s1806_s11 }
  0x2a   : > { %p1803_p7 = pnand %p1801_p5, %p2172_p8  ;;  %p1809_p0 = scmp.lt.s32.totalorder %s1807_s12, %s1800_s28 }
  0x2c   : > { %p1804_p9 = pneg %p1803_p7  ;;  %p1810_p11 = por %p1809_p0, %p1808_p3 }
  0x2e   : > { %p1811_p12 = pnand %p1810_p11, %p1804_p9 }
  0x30   : > { %1814 = shalt.err (!%p1811_p12)
}
  0x31   : > { %1626 = dma.hbm_to_vmem [thread:$0]  (!%p2150_p6), %s2160_s13, 128, %s2164_s15, %s2166_s16  }
  0x32   : > { %s2197_s14 = sadd.s32 4294967295, %s2009_s26   ;;  %s1572_s17 = sadd.s32 4294967294, %s2009_s26  }
  0x33   : > { %p51_p0 = scmp.ne.s32.totalorder %s2001_s24, %s1997_s23  ;;  %p2917_p3 = scmp.eq.s32.totalorder %s2197_s14, 0 }
  0x34   : > { %p169_p10 = scmp.eq.s32.totalorder %s2197_s14, 1  ;;  %p175_p13 = scmp.eq.s32.totalorder %s1572_s17, 1 }
  0x35   : > { %p2206_p1 = por %p2917_p3, %p51_p0  ;;  %p1573_p2 = scmp.ge.s32.totalorder %s2009_s26, 1 }
  0x36   : > { %p2940_p4 = scmp.ne.s32.totalorder %s2005_s25, %s2001_s24  ;;  %p2218_p7 = por %p175_p13, %p51_p0 }
  0x37   : > { %s2939_s19 = scalar_select %p2206_p1, 1, 0 }
  0x38   : > { %p2214_p5 = por %p169_p10, %p2940_p4  ;;  %p208_p9 = scmp.lt.s32.totalorder %s2009_s26, 3 }
  0x39   : > { %s2942_s15 = scalar_select %p2218_p7, 1, 0 }
  0x3a   : > { %s2941_s13 = scalar_select %p2214_p5, 1, 0 }
  0x3b   : > { %2943 = sst [smem:[#allocation23_spill]] %s2942_s15  ;;  %p2223_p11 = pnand %p1573_p2, %p208_p9 }
  0x3c   : > { %s2012_s21 = smov [#allocation10]   ;;  %s2236_s10 = scalar_lea.hbm %s2906_s0, %s1577_s8 }
  0x3d   : > { %s2944_s20 = scalar_select %p2223_p11, 1, 0 }
  0x3e   : > { %s220_s22 = sshll.u32 %s2012_s21, 4  ;;  %p1616_p12 = pneg %p2223_p11  ;;  %s2227_s22 = int_to_ptr.vmem [resolvable:$true] %s220_s22 }
  0x3f   : > { %s241_s12 = scalar_lea.vmem [#allocation4], %s1576_s7  ;;  %s1815_s25 = scalar_lea.hbm %s2909_s3, 6272 }
  0x40   : > { %p2240_p0 = pnand %p1616_p12, %p2917_p3  ;;  %s248_s17 = sshll.u32 %s241_s12, 4  ;;  %s2246_s17 = int_to_ptr.vmem [resolvable:$true] %s248_s17 }
  0x41   : > { %p1816_p10 = scmp.ne.s32.totalorder %s2909_s3, %s1815_s25  ;;  %p1822_p9 = scmp.lt.u32.totalorder %s1815_s25, %s2909_s3 }
  0x42   : > { %p1817_p13 = pneg %p2240_p0 }
  0x44   : > { %p1818_p2 = pnand %p1817_p13, %p1816_p10 }
  0x46   : > { %p1819_p4 = pneg %p1818_p2 }
  0x48   : > { %p1824_p12 = pnand %p1822_p9, %p1819_p4 }
  0x4a   : > { %1827 = shalt.err (!%p1824_p12)
}
  0x4b   : > { %s1828_s7 = scalar_lea.vmem %s2227_s22, 6272  ;;  %p1836_p1 = scmp.lt.s32.totalorder %s2227_s22, %s2227_s22 }
  0x4c   : > { %p1829_p3 = scmp.ne.s32.totalorder %s2227_s22, %s1828_s7  ;;  %p1837_p11 = scmp.lt.s32.totalorder %s1828_s7, %s1828_s7 }
  0x4e   : > { %p1831_p7 = pnand %p1829_p3, %p1817_p13  ;;  %p1838_p6 = por %p1837_p11, %p1836_p1 }
  0x50   : > { %p1832_p5 = pneg %p1831_p7 }
  0x52   : > { %p1839_p8 = pnand %p1838_p6, %p1832_p5 }
  0x54   : > { %1842 = shalt.err (!%p1839_p8)
}
  0x55   : > { %s2013_s1 = smov 128   ;;  %s2014_s25 = smov 8  }
  0x56   : > { %1619 = dma.hbm_to_vmem [thread:$0]  (!%p2240_p0), %s2909_s3, 6272, %s2227_s22, [#allocation11], %s2013_s1, %s2013_s1, %s2014_s25  }
  0x57   : > { %s238_s12 = scalar_lea.sflag [#allocation5], %s2146_s30  ;;  %s1843_s27 = scalar_lea.hbm %s2236_s10, 128 }
  0x58   : > { %p1844_p3 = scmp.ne.s32.totalorder %s2236_s10, %s1843_s27  ;;  %p2946_p6 = scmp.ne.s32.totalorder %s2938_s18, 0 }
  0x59   : > { %s1848_s7 = scalar_lea.hbm %s2906_s0, 256  ;;  %p1849_p5 = scmp.lt.u32.totalorder %s2236_s10, %s2906_s0 }
  0x5a   : > { %p1846_p8 = pnand %p1844_p3, %p2946_p6  ;;  %p1850_p7 = scmp.lt.u32.totalorder %s1848_s7, %s1843_s27 }
  0x5b   : > { %p1852_p10 = scmp.lt.u32.totalorder %s1843_s27, %s2236_s10 }
  0x5c   : > { %p1847_p1 = pneg %p1846_p8  ;;  %p1851_p11 = por %p1850_p7, %p1849_p5 }
  0x5e   : > { %p1853_p13 = por %p1852_p10, %p1851_p11 }
  0x60   : > { %p1854_p2 = pnand %p1853_p13, %p1847_p1 }
  0x62   : > { %1857 = shalt.err (!%p1854_p2)
}
  0x63   : > { %s1858_s22 = scalar_lea.vmem %s2246_s17, 128  ;;  %s2015_s11 = smov [#allocation4]  }
  0x64   : > { %p1859_p0 = scmp.ne.s32.totalorder %s2246_s17, %s1858_s22  ;;  %s1863_s1 = sshll.u32 %s2015_s11, 4  ;;  %s1864_s1 = int_to_ptr.vmem [resolvable:$false] %s1863_s1 }
  0x65   : > { %s1865_s15 = scalar_lea.vmem %s1864_s1, 256  ;;  %p1866_p12 = scmp.lt.s32.totalorder %s2246_s17, %s1864_s1 }
  0x66   : > { %p1861_p4 = pnand %p1859_p0, %p2946_p6  ;;  %p1867_p3 = scmp.lt.s32.totalorder %s1865_s15, %s1858_s22 }
  0x68   : > { %p1862_p9 = pneg %p1861_p4  ;;  %p1868_p8 = por %p1867_p3, %p1866_p12 }
  0x6a   : > { %p1869_p5 = pnand %p1868_p8, %p1862_p9 }
  0x6c   : > { %1872 = shalt.err (!%p1869_p5)
}
  0x6d   : > { %p2947_p1 = scmp.ne.s32.totalorder %s2936_s9, 0  ;;  %s1599_s21 = sshll.u32 %s2009_s26, 8 }
  0x6e   : > { %s2948_s25 = sshll.u32 %s2146_s30, 4  ;;  %s283_s28 = scalar_lea.hbm %s2908_s2, %s1599_s21 }
  0x6f   : > { %1623 = dma.hbm_to_vmem [thread:$0]  (!%p2947_p1), %s2236_s10, 128, %s2246_s17, %s238_s12  }
  0x70   : > { %s277_s4 = scalar_lea.vmem [#allocation9], %s2948_s25  ;;  %s1873_s7 = scalar_lea.hbm %s283_s28, 256 }
  0x71   : > { %s285_s29 = sshll.u32 %s277_s4, 4  ;;  %p1874_p7 = scmp.ne.s32.totalorder %s283_s28, %s1873_s7  ;;  %s286_s29 = int_to_ptr.vmem [resolvable:$true] %s285_s29 }
  0x72   : > { %s1878_s1 = scalar_lea.hbm %s2908_s2, 512  ;;  %p1879_p13 = scmp.lt.u32.totalorder %s283_s28, %s2908_s2 }
  0x73   : > { %p1876_p11 = pnand %p1874_p7, %p2946_p6  ;;  %p1880_p2 = scmp.lt.u32.totalorder %s1878_s1, %s1873_s7 }
  0x74   : > { %p1882_p4 = scmp.lt.u32.totalorder %s1873_s7, %s283_s28 }
  0x75   : > { %p1877_p10 = pneg %p1876_p11  ;;  %p1881_p0 = por %p1880_p2, %p1879_p13 }
  0x77   : > { %p1883_p9 = por %p1882_p4, %p1881_p0 }
  0x79   : > { %p1884_p12 = pnand %p1883_p9, %p1877_p10 }
  0x7b   : > { %1887 = shalt.err (!%p1884_p12)
}
  0x7c   : > { %s1888_s30 = scalar_lea.vmem %s286_s29, 256  ;;  %s2016_s17 = smov [#allocation9]  }
  0x7d   : > { %p1889_p3 = scmp.ne.s32.totalorder %s286_s29, %s1888_s30  ;;  %s1893_s12 = sshll.u32 %s2016_s17, 4  ;;  %s1894_s12 = int_to_ptr.vmem [resolvable:$false] %s1893_s12 }
  0x7e   : > { %s1895_s21 = scalar_lea.vmem %s1894_s12, 512  ;;  %p1896_p7 = scmp.lt.s32.totalorder %s286_s29, %s1894_s12 }
  0x7f   : > { %p1891_p8 = pnand %p1889_p3, %p2946_p6  ;;  %p1897_p11 = scmp.lt.s32.totalorder %s1895_s21, %s1888_s30 }
  0x81   : > { %p1892_p5 = pneg %p1891_p8  ;;  %p1898_p1 = por %p1897_p11, %p1896_p7 }
  0x83   : > { %p1899_p2 = pnand %p1898_p1, %p1892_p5 }
  0x85   : > { %1902 = shalt.err (!%p1899_p2)
}
  0x86   : > { %p2949_p13 = scmp.ne.s32.totalorder %s2936_s9, 0  ;;  %p2950_p10 = scmp.ne.s32.totalorder %s2944_s20, 0 }
  0x88   : > { %1629 = dma.hbm_to_vmem [thread:$0]  (!%p2949_p13), %s283_s28, 256, %s286_s29, %s2166_s16  }
  0x89   : > { %294 = sbr.rel (%p2950_p10) target bundleno = 775 (0x307), region = 40 }
  0x90   : > { %s2314_s18 = sand.u32 1, %s2001_s24   ;;  %p2951_p6 = scmp.ne.s32.totalorder %s2939_s19, 0 }
  0x91   : > { %s1584_s25 = sshll.u32 %s2314_s18, 3  ;;  %s297_s4 = scalar_lea.sflag [#allocation5], %s2314_s18 }
  0x92   : > { %s300_s27 = scalar_lea.vmem [#allocation4], %s1584_s25 }
  0x93   : > { %1976 = dma.done.wait (%p2951_p6), %s297_s4, 128  }
  0x94   : > { %1978 = vsyncadd (%p2951_p6), %s297_s4, 4294967168  ;;  %s305_s9 = sand.u32 1, %s2197_s14   ;;  %s309_s20 = scalar_lea.vmem [#allocation7], %s1584_s25 }
  0x95   : > { %s306_s16 = scalar_lea.sflag [#allocation8], %s305_s9 }
  0x96   : > { %1980 = dma.done.wait (%p2951_p6), %s306_s16, 384  }
  0x97   : > { %1982 = vsyncadd (%p2951_p6), %s306_s16, 4294966912  ;;  %s2328_s29 = sshll.u32 %s2314_s18, 4  ;;  %p2952_p1 = scmp.eq.s32.totalorder %s2197_s14, 0 }
  0x98   : > { %s318_s8 = scalar_lea.vmem [#allocation9], %s2328_s29 }
  0x99   : > { %1984 = dma.done.wait (%p2952_p1), [#allocation11], 6272   ;;  %p2953_p0 = pmov %p2952_p1 }
  0x9a   : > { %v2017_v0 = vmov 0.0   ;;  %v2018_v1 = vmov 0   ;;  %v367_v2 = vld [vmem:[%s318_s8 + $0x8] sm:$0xff]  ;;  %v366_v3 = vld [vmem:[%s318_s8] sm:$0xff]  ;;  %vm370_vm0 = vcmask 64512   ;;  %v484_v15 = vlaneseq  ;;  %s2020_s19 = smov 50  }
  0x9b   : > { %1986 = vsyncadd (%p2953_p0), [#allocation11], 4294961024  ;;  %438 = vmatprep.mubr.f32.mxu0 %v2017_v0  ;;  %1727 = vset.pattern.permute.xlu0 %v2018_v1  ;;  %v369_v4 = vld [vmem:[%s309_s20] sm:$0xff]  ;;  %v368_v5 = vld [vmem:[%s300_s27] sm:$0xff]  ;;  %v2019_v13 = vmov 1966171168  }
  0x9c   : > { %374 = vmatprep.subr.mxu0 %v367_v2  ;;  %447 = vperm.xlu0 %1727, %v368_v5   ;;  %v482_v14 = vunpack.c.l.s4 %v2019_v13  ;;  %v2354_v25 = vshrl.u32 %v484_v15, 7  ;;  %vm498_vm1 = vcmp.lt.s32.totalorder %v484_v15, 256  ;;  %s2021_s28 = smov 51   ;;  %s2022_s7 = smov 49   ;;  %v2422_v56 = vand.u32 127, %v484_v15  ;;  %v581_v63 = vld [vmem:[#allocation10 + $0x8] sm:$0xff] }
  0x9d   : > { %375 = vmatpush1.msra.mxu0 %v366_v3  ;;  %s2023_s22 = smov 48   ;;  %s2024_s11 = smov 47   ;;  %v613_v0 = vld [vmem:[#allocation10 + $0x18] sm:$0xff]  ;;  %v583_v5 = vcombine.high %v581_v63, %v581_v63 }
  0x9e   : > { %1590 = vmatmul.mubr.msk.f32.vlgmr.msra.gmra.mrb[0].mxu0 %vm370_vm0, %v369_v4  ;;  %v483_v24 = vunpack.c.0.s8 %v482_v14  ;;  %2958 = vst [vmem:[#allocation28_spill] sm:$0xff] %v2354_v25  ;;  %s2025_s1 = smov 46   ;;  %s2026_s15 = smov 45   ;;  %vm577_vm2 = vcmp.lt.s32.totalorder %v2422_v56, 50  ;;  %vm593_vm3 = vcmp.lt.s32.totalorder %v2422_v56, 49  ;;  %vm609_vm4 = vcmp.lt.s32.totalorder %v2422_v56, 48 }
  0x9f   : > { %s2027_s10 = smov 35   ;;  %s2028_s30 = smov 34   ;;  %vm625_vm5 = vcmp.lt.s32.totalorder %v2422_v56, 47  ;;  %vm641_vm6 = vcmp.lt.s32.totalorder %v2422_v56, 46  ;;  %vm657_vm7 = vcmp.lt.s32.totalorder %v2422_v56, 45  ;;  %vm673_vm8 = vcmp.lt.s32.totalorder %v2422_v56, 35 }
  0xa0   : > { %v486_v34 = vsub.s32 %v483_v24, %v2354_v25  ;;  %s2029_s17 = smov 33   ;;  %s2030_s12 = smov 32   ;;  %vm689_vm9 = vcmp.lt.s32.totalorder %v2422_v56, 34  ;;  %vm705_vm10 = vcmp.lt.s32.totalorder %v2422_v56, 33  ;;  %vm721_vm11 = vcmp.lt.s32.totalorder %v2422_v56, 32 }
  0xa1   : > { %s2031_s21 = smov 31   ;;  %s2032_s25 = smov 30   ;;  %vm737_vm12 = vcmp.lt.s32.totalorder %v2422_v56, 31  ;;  %vm753_vm13 = vcmp.lt.s32.totalorder %v2422_v56, 30  ;;  %vm769_vm14 = vcmp.lt.s32.totalorder %v2422_v56, 29  ;;  %vm785_vm15 = vcmp.lt.s32.totalorder %v2422_v56, 19 }
  0xa2   : > { %s2033_s4 = smov 29   ;;  %s2034_s27 = smov 19   ;;  %vm801_vm0 = vcmp.lt.s32.totalorder %v2422_v56, 18 }
  0xa3   : > { %s2035_s9 = smov 18   ;;  %s2036_s16 = smov 17  }
  0xa4   : > { %s2037_s20 = smov 16   ;;  %s2038_s8 = smov 15  }
  0xa5   : > { %p2965_p9 = scmp.ne.s32.totalorder %s2941_s13, 0 }
 0x11b   : > { %v448_v6 = vpop.permute.xlu0 %447 }
 0x11c   : > { %v2335_v7 = vmul.f32 %v448_v6, %v366_v3  ;;  %v2337_v8 = vmul.f32 %v448_v6, %v367_v2  ;;  %v615_v6 = vcombine.high %v613_v0, %v613_v0 }
 0x11e   : > { %2954 = vst [vmem:[#allocation24_spill] sm:$0xff] %v2335_v7  ;;  %2955 = vst [vmem:[#allocation25_spill] sm:$0xff] %v2337_v8  ;;  %v452_v9 = vrot.slane %v2335_v7, 4  ;;  %v458_v10 = vrot.slane %v2337_v8, 4  ;;  %v2342_v11 = vsub.f32 %v366_v3, %v2335_v7  ;;  %v2345_v12 = vsub.f32 %v367_v2, %v2337_v8 }
 0x120   : > { %2956 = vst [vmem:[#allocation26_spill] sm:$0xff] %v2342_v11  ;;  %2957 = vst [vmem:[#allocation27_spill] sm:$0xff] %v2345_v12  ;;  %v453_v16 = vmax.f32 %v2335_v7, %v452_v9  ;;  %v459_v17 = vmax.f32 %v2337_v8, %v458_v10  ;;  %v466_v18 = vrot.slane %v2342_v11, 4  ;;  %v472_v19 = vrot.slane %v2345_v12, 4 }
 0x122   : > { %v454_v20 = vrot.slane %v453_v16, 2  ;;  %v460_v21 = vrot.slane %v459_v17, 2  ;;  %v467_v22 = vmax.f32 %v2342_v11, %v466_v18  ;;  %v473_v23 = vmax.f32 %v2345_v12, %v472_v19  ;;  %v645_v19 = vld [vmem:[#allocation10 + $0x28] sm:$0xff] }
 0x124   : > { %v455_v26 = vmax.f32 %v453_v16, %v454_v20  ;;  %v461_v27 = vmax.f32 %v459_v17, %v460_v21  ;;  %v468_v28 = vrot.slane %v467_v22, 2  ;;  %v474_v29 = vrot.slane %v473_v23, 2 }
 0x126   : > { %v456_v30 = vrot.slane %v455_v26, 1  ;;  %v462_v31 = vrot.slane %v461_v27, 1  ;;  %v469_v32 = vmax.f32 %v467_v22, %v468_v28  ;;  %v475_v33 = vmax.f32 %v473_v23, %v474_v29 }
 0x128   : > { %v457_v35 = vmax.f32 %v455_v26, %v456_v30  ;;  %v463_v36 = vmax.f32 %v461_v27, %v462_v31  ;;  %v470_v37 = vrot.slane %v469_v32, 1  ;;  %v476_v38 = vrot.slane %v475_v33, 1 }
 0x129   : > { %v647_v27 = vcombine.high %v645_v19, %v645_v19 }
 0x12a   : > { %v471_v39 = vmax.f32 %v469_v32, %v470_v37  ;;  %v477_v40 = vmax.f32 %v475_v33, %v476_v38  ;;  %v503_v41 = vcombine.low %v457_v35, %v463_v36 }
 0x12c   : > { %v534_v42 = vcombine.low %v471_v39, %v477_v40  ;;  %v510_v43 = vrot.slane %v503_v41, %v486_v34 }
 0x12e   : > { %v517_v44 = vrot.slane %v510_v43, %v486_v34  ;;  %v541_v45 = vrot.slane %v534_v42, %v486_v34 }
 0x130   : > { %520 = vst.msk [vmem:[#allocation2 + $0x1] ss:$4 sm:$0x3] %vm498_vm1, %v517_v44  ;;  %v548_v46 = vrot.slane %v541_v45, %v486_v34 }
 0x132   : > { %551 = vst.msk [vmem:[#allocation2 + $0x3] ss:$4 sm:$0x3] %vm498_vm1, %v548_v46 }
 0x171   : > { %v440_v47 = vpop.f32.mrb[0].mxu0 }
 0x172   : > { %v442_v48 = vpop.f32.mrb[1].mxu0 }
 0x173   : > { %v480_v49 = vcombine.low %v440_v47, %v442_v48  ;;  %v709_v48 = vld [vmem:[#allocation10 + $0x48] sm:$0xff] }
 0x175   : > { %v487_v50 = vrot.slane %v480_v49, %v486_v34 }
 0x177   : > { %v494_v51 = vrot.slane %v487_v50, %v486_v34  ;;  %v521_v52 = vcombine.high %v487_v50, %v487_v50 }
 0x179   : > { %500 = vst.msk [vmem:[#allocation2] ss:$4 sm:$0x3] %vm498_vm1, %v494_v51  ;;  %v528_v53 = vrot.slane %v521_v52, %v486_v34  ;;  %v677_v34 = vld [vmem:[#allocation10 + $0x38] sm:$0xff] }
 0x17a   : > { %v679_v41 = vcombine.high %v677_v34, %v677_v34 }
 0x17b   : > { %531 = vst.msk [vmem:[#allocation2 + $0x2] ss:$4 sm:$0x3] %vm498_vm1, %v528_v53  ;;  %vm817_vm1 = vcmp.lt.s32.totalorder %v2422_v56, 17 }
 0x182   : > { %v2358_v54 = vld [vmem:[#allocation2] sm:$0xff] }
 0x183   : > { %573 = vrot.lane.b32.xlu1 %v2358_v54, %s2020_s19  ;;  %556 = vrot.lane.b32.xlu0 %v2358_v54, %s2021_s28  ;;  %v2365_v55 = vcombine.high %v2358_v54, %v2358_v54 }
 0x187   : > { %589 = vrot.lane.b32.xlu1 %v2358_v54, %s2022_s7  ;;  %575 = vrot.lane.b32.xlu0 %v2365_v55, %s2020_s19  ;;  %s2039_s19 = smov 14  }
 0x18b   : > { %605 = vrot.lane.b32.xlu1 %v2358_v54, %s2023_s22  ;;  %591 = vrot.lane.b32.xlu0 %v2365_v55, %s2022_s7  ;;  %s2040_s7 = smov 13  }
 0x18f   : > { %621 = vrot.lane.b32.xlu1 %v2358_v54, %s2024_s11  ;;  %607 = vrot.lane.b32.xlu0 %v2365_v55, %s2023_s22  ;;  %s2041_s22 = smov 3  }
 0x193   : > { %637 = vrot.lane.b32.xlu1 %v2358_v54, %s2025_s1  ;;  %623 = vrot.lane.b32.xlu0 %v2365_v55, %s2024_s11  ;;  %s2042_s11 = smov 2  }
 0x197   : > { %653 = vrot.lane.b32.xlu1 %v2358_v54, %s2026_s15  ;;  %639 = vrot.lane.b32.xlu0 %v2365_v55, %s2025_s1  ;;  %s2043_s1 = smov 1  }
 0x19b   : > { %669 = vrot.lane.b32.xlu1 %v2358_v54, %s2027_s10  ;;  %655 = vrot.lane.b32.xlu0 %v2365_v55, %s2026_s15  ;;  %s2044_s15 = smov 127  }
 0x19f   : > { %685 = vrot.lane.b32.xlu1 %v2358_v54, %s2028_s30  ;;  %671 = vrot.lane.b32.xlu0 %v2365_v55, %s2027_s10  ;;  %s2045_s10 = smov 126  }
 0x1a3   : > { %701 = vrot.lane.b32.xlu1 %v2358_v54, %s2029_s17  ;;  %687 = vrot.lane.b32.xlu0 %v2365_v55, %s2028_s30  ;;  %s2046_s30 = smov 125  }
 0x1a7   : > { %717 = vrot.lane.b32.xlu1 %v2358_v54, %s2030_s12  ;;  %703 = vrot.lane.b32.xlu0 %v2365_v55, %s2029_s17  ;;  %s2047_s17 = smov 115  }
 0x1ab   : > { %733 = vrot.lane.b32.xlu1 %v2358_v54, %s2031_s21  ;;  %719 = vrot.lane.b32.xlu0 %v2365_v55, %s2030_s12  ;;  %s2048_s12 = smov 114  }
 0x1af   : > { %749 = vrot.lane.b32.xlu1 %v2358_v54, %s2032_s25  ;;  %735 = vrot.lane.b32.xlu0 %v2365_v55, %s2031_s21  ;;  %s2049_s21 = smov 113  }
 0x1b3   : > { %765 = vrot.lane.b32.xlu1 %v2358_v54, %s2033_s4  ;;  %751 = vrot.lane.b32.xlu0 %v2365_v55, %s2032_s25  ;;  %s2050_s25 = smov 112  }
 0x1b7   : > { %781 = vrot.lane.b32.xlu1 %v2358_v54, %s2034_s27  ;;  %767 = vrot.lane.b32.xlu0 %v2365_v55, %s2033_s4  ;;  %s2051_s4 = smov 111  }
 0x1bb   : > { %797 = vrot.lane.b32.xlu1 %v2358_v54, %s2035_s9  ;;  %783 = vrot.lane.b32.xlu0 %v2365_v55, %s2034_s27  ;;  %s2052_s27 = smov 110  }
 0x1bf   : > { %813 = vrot.lane.b32.xlu1 %v2358_v54, %s2036_s16  ;;  %799 = vrot.lane.b32.xlu0 %v2365_v55, %s2035_s9  ;;  %s2053_s9 = smov 109  }
 0x1c3   : > { %829 = vrot.lane.b32.xlu1 %v2358_v54, %s2037_s20  ;;  %815 = vrot.lane.b32.xlu0 %v2365_v55, %s2036_s16  ;;  %s2054_s16 = smov 99  }
 0x1c7   : > { %845 = vrot.lane.b32.xlu1 %v2358_v54, %s2038_s8  ;;  %831 = vrot.lane.b32.xlu0 %v2365_v55, %s2037_s20  ;;  %s2055_s20 = smov 98  }
 0x1cb   : > { %861 = vrot.lane.b32.xlu1 %v2358_v54, %s2039_s19  ;;  %847 = vrot.lane.b32.xlu0 %v2365_v55, %s2038_s8  ;;  %s2056_s8 = smov 97  }
 0x1cf   : > { %877 = vrot.lane.b32.xlu1 %v2358_v54, %s2040_s7  ;;  %863 = vrot.lane.b32.xlu0 %v2365_v55, %s2039_s19  ;;  %s2058_s19 = smov 95  }
 0x1d3   : > { %893 = vrot.lane.b32.xlu1 %v2358_v54, %s2041_s22  ;;  %879 = vrot.lane.b32.xlu0 %v2365_v55, %s2040_s7  ;;  %s2059_s7 = smov 94  }
 0x1d7   : > { %909 = vrot.lane.b32.xlu1 %v2358_v54, %s2042_s11  ;;  %895 = vrot.lane.b32.xlu0 %v2365_v55, %s2041_s22  ;;  %s2060_s22 = smov 93  }
 0x1db   : > { %925 = vrot.lane.b32.xlu1 %v2358_v54, %s2043_s1  ;;  %911 = vrot.lane.b32.xlu0 %v2365_v55, %s2042_s11  ;;  %s2061_s11 = smov 83  }
 0x1df   : > { %949 = vrot.lane.b32.xlu1 %v2358_v54, %s2044_s15  ;;  %927 = vrot.lane.b32.xlu0 %v2365_v55, %s2043_s1  ;;  %s2062_s1 = smov 82  }
 0x1e3   : > { %965 = vrot.lane.b32.xlu1 %v2358_v54, %s2045_s10  ;;  %951 = vrot.lane.b32.xlu0 %v2365_v55, %s2044_s15  ;;  %s2063_s15 = smov 81  }
 0x1e7   : > { %981 = vrot.lane.b32.xlu1 %v2358_v54, %s2046_s30  ;;  %967 = vrot.lane.b32.xlu0 %v2365_v55, %s2045_s10  ;;  %s2064_s10 = smov 80  }
 0x1eb   : > { %997 = vrot.lane.b32.xlu1 %v2358_v54, %s2047_s17  ;;  %983 = vrot.lane.b32.xlu0 %v2365_v55, %s2046_s30  ;;  %s2065_s30 = smov 79  }
 0x1ef   : > { %1013 = vrot.lane.b32.xlu1 %v2358_v54, %s2048_s12  ;;  %999 = vrot.lane.b32.xlu0 %v2365_v55, %s2047_s17  ;;  %s2066_s17 = smov 78  }
 0x1f3   : > { %1029 = vrot.lane.b32.xlu1 %v2358_v54, %s2049_s21  ;;  %1015 = vrot.lane.b32.xlu0 %v2365_v55, %s2048_s12  ;;  %s2067_s12 = smov 77  }
 0x1f5   : > { %v574_v57 = vpop.permute.xlu1 %573  ;;  %v2426_v58 = vpop.permute.xlu0 %556 }
 0x1f7   : > { %1045 = vrot.lane.b32.xlu1 %v2358_v54, %s2050_s25  ;;  %1031 = vrot.lane.b32.xlu0 %v2365_v55, %s2049_s21  ;;  %s1335_s21 = sld [smem:[#allocation3]] }
 0x1f9   : > { %v590_v59 = vpop.permute.xlu1 %589  ;;  %v576_v60 = vpop.permute.xlu0 %575 }
 0x1fa   : > { %v578_v61 = vsel %vm577_vm2, %v574_v57, %v576_v60  ;;  %v579_v62 = vsel %vm577_vm2, %v576_v60, %v574_v57  ;;  %vm833_vm2 = vcmp.lt.s32.totalorder %v2422_v56, 16 }
 0x1fb   : > { %1061 = vrot.lane.b32.xlu1 %v2358_v54, %s2051_s4  ;;  %1047 = vrot.lane.b32.xlu0 %v2365_v55, %s2050_s25  ;;  %v585_v13 = vmul.f32 %v581_v63, %v579_v62  ;;  %v586_v16 = vmul.f32 %v583_v5, %v578_v61  ;;  %s1600_s25 = sshll.u32 %s2197_s14, 8 }
 0x1fd   : > { %v606_v1 = vpop.permute.xlu1 %605  ;;  %v592_v2 = vpop.permute.xlu0 %591 }
 0x1fe   : > { %v2434_v3 = vsel %vm593_vm3, %v590_v59, %v592_v2  ;;  %v2436_v4 = vsel %vm593_vm3, %v592_v2, %v590_v59  ;;  %v711_v59 = vcombine.high %v709_v48, %v709_v48  ;;  %v741_v2 = vld [vmem:[#allocation10 + $0x58] sm:$0xff]  ;;  %vm849_vm3 = vcmp.lt.s32.totalorder %v2422_v56, 15 }
 0x1ff   : > { %1077 = vrot.lane.b32.xlu1 %v2358_v54, %s2052_s27  ;;  %1063 = vrot.lane.b32.xlu0 %v2365_v55, %s2051_s4  ;;  %s358_s4 = scalar_lea.vmem [#allocation12], %s2328_s29 }
 0x201   : > { %v622_v9 = vpop.permute.xlu1 %621  ;;  %v608_v10 = vpop.permute.xlu0 %607 }
 0x202   : > { %v610_v14 = vsel %vm609_vm4, %v606_v1, %v608_v10  ;;  %v611_v15 = vsel %vm609_vm4, %v608_v10, %v606_v1  ;;  %vm865_vm4 = vcmp.lt.s32.totalorder %v2422_v56, 14 }
 0x203   : > { %v617_v17 = vmul.f32 %v613_v0, %v611_v15  ;;  %v618_v18 = vmul.f32 %v615_v6, %v610_v14  ;;  %1093 = vrot.lane.b32.xlu1 %v2358_v54, %s2053_s9  ;;  %1079 = vrot.lane.b32.xlu0 %v2365_v55, %s2052_s27  ;;  %v743_v15 = vcombine.high %v741_v2, %v741_v2  ;;  %s1403_s27 = sshll.u32 %s358_s4, 4  ;;  %s2834_s27 = int_to_ptr.vmem [resolvable:$true] %s1403_s27 }
 0x205   : > { %v619_v20 = vadd.f32 %v617_v17, %v585_v13  ;;  %v620_v21 = vadd.f32 %v618_v18, %v586_v16  ;;  %v638_v22 = vpop.permute.xlu1 %637  ;;  %v624_v23 = vpop.permute.xlu0 %623 }
 0x206   : > { %v2444_v24 = vsel %vm625_vm5, %v622_v9, %v624_v23  ;;  %v2446_v26 = vsel %vm625_vm5, %v624_v23, %v622_v9  ;;  %vm881_vm5 = vcmp.lt.s32.totalorder %v2422_v56, 13 }
 0x207   : > { %1109 = vrot.lane.b32.xlu1 %v2358_v54, %s2054_s16  ;;  %1095 = vrot.lane.b32.xlu0 %v2365_v55, %s2053_s9  ;;  %s365_s9 = scalar_lea.vmem [#allocation13], %s2328_s29 }
 0x209   : > { %v654_v28 = vpop.permute.xlu1 %653  ;;  %v640_v29 = vpop.permute.xlu0 %639 }
 0x20a   : > { %v642_v30 = vsel %vm641_vm6, %v638_v22, %v640_v29  ;;  %v643_v31 = vsel %vm641_vm6, %v640_v29, %v638_v22  ;;  %v773_v22 = vld [vmem:[#allocation10 + $0x68] sm:$0xff]  ;;  %vm897_vm6 = vcmp.lt.s32.totalorder %v2422_v56, 3 }
 0x20b   : > { %v649_v32 = vmul.f32 %v645_v19, %v643_v31  ;;  %v650_v33 = vmul.f32 %v647_v27, %v642_v30  ;;  %1125 = vrot.lane.b32.xlu1 %v2358_v54, %s2055_s20  ;;  %1111 = vrot.lane.b32.xlu0 %v2365_v55, %s2054_s16  ;;  %s1417_s16 = sshll.u32 %s365_s9, 4  ;;  %s2842_s16 = int_to_ptr.vmem [resolvable:$true] %s1417_s16 }
 0x20d   : > { %v651_v35 = vadd.f32 %v649_v32, %v619_v20  ;;  %v652_v36 = vadd.f32 %v650_v33, %v620_v21  ;;  %v670_v37 = vpop.permute.xlu1 %669  ;;  %v656_v38 = vpop.permute.xlu0 %655  ;;  %v775_v32 = vcombine.high %v773_v22, %v773_v22 }
 0x20e   : > { %v2454_v39 = vsel %vm657_vm7, %v654_v28, %v656_v38  ;;  %v2456_v40 = vsel %vm657_vm7, %v656_v38, %v654_v28  ;;  %vm913_vm7 = vcmp.lt.s32.totalorder %v2422_v56, 2 }
 0x20f   : > { %1127 = vrot.lane.b32.xlu0 %v2365_v55, %s2055_s20  ;;  %558 = vrot.lane.b32.xlu1 %v2365_v55, %s2021_s28  ;;  %s2057_s28 = smov 96  }
 0x211   : > { %v686_v42 = vpop.permute.xlu1 %685  ;;  %v672_v43 = vpop.permute.xlu0 %671 }
 0x212   : > { %v674_v44 = vsel %vm673_vm8, %v670_v37, %v672_v43  ;;  %v675_v45 = vsel %vm673_vm8, %v672_v43, %v670_v37  ;;  %vm929_vm8 = vcmp.lt.s32.totalorder %v2422_v56, 1 }
 0x213   : > { %v681_v46 = vmul.f32 %v677_v34, %v675_v45  ;;  %v682_v47 = vmul.f32 %v679_v41, %v674_v44  ;;  %1143 = vrot.lane.b32.xlu0 %v2365_v55, %s2056_s8  ;;  %1141 = vrot.lane.b32.xlu1 %v2358_v54, %s2056_s8  ;;  %v805_v41 = vld [vmem:[#allocation10 + $0x78] sm:$0xff] }
 0x215   : > { %v683_v49 = vadd.f32 %v681_v46, %v651_v35  ;;  %v684_v50 = vadd.f32 %v682_v47, %v652_v36  ;;  %v702_v51 = vpop.permute.xlu1 %701  ;;  %v688_v52 = vpop.permute.xlu0 %687 }
 0x216   : > { %v2465_v53 = vsel %vm689_vm9, %v686_v42, %v688_v52  ;;  %v2467_v57 = vsel %vm689_vm9, %v688_v52, %v686_v42  ;;  %vm953_vm9 = vcmp.lt.s32.totalorder %v2422_v56, 127 }
 0x217   : > { %1159 = vrot.lane.b32.xlu0 %v2365_v55, %s2057_s28  ;;  %1157 = vrot.lane.b32.xlu1 %v2358_v54, %s2057_s28  ;;  %s2830_s28 = scalar_lea.hbm %s2911_s5, %s1600_s25 }
 0x219   : > { %v718_v60 = vpop.permute.xlu1 %717  ;;  %v704_v61 = vpop.permute.xlu0 %703 }
 0x21a   : > { %v706_v62 = vsel %vm705_vm10, %v702_v51, %v704_v61  ;;  %v707_v63 = vsel %vm705_vm10, %v704_v61, %v702_v51  ;;  %v837_v61 = vld [vmem:[#allocation10 + $0x88] sm:$0xff]  ;;  %vm969_vm10 = vcmp.lt.s32.totalorder %v2422_v56, 126 }
 0x21b   : > { %v713_v0 = vmul.f32 %v709_v48, %v707_v63  ;;  %v714_v1 = vmul.f32 %v711_v59, %v706_v62  ;;  %1175 = vrot.lane.b32.xlu0 %v2365_v55, %s2058_s19  ;;  %1173 = vrot.lane.b32.xlu1 %v2358_v54, %s2058_s19  ;;  %v807_v48 = vcombine.high %v805_v41, %v805_v41  ;;  %s2840_s19 = scalar_lea.hbm %s2912_s6, %s1600_s25 }
 0x21d   : > { %v715_v5 = vadd.f32 %v713_v0, %v683_v49  ;;  %v716_v6 = vadd.f32 %v714_v1, %v684_v50  ;;  %v734_v9 = vpop.permute.xlu1 %733  ;;  %v720_v10 = vpop.permute.xlu0 %719 }
 0x21e   : > { %v2475_v13 = vsel %vm721_vm11, %v718_v60, %v720_v10  ;;  %v2477_v14 = vsel %vm721_vm11, %v720_v10, %v718_v60  ;;  %vm985_vm11 = vcmp.lt.s32.totalorder %v2422_v56, 125 }
 0x21f   : > { %1191 = vrot.lane.b32.xlu0 %v2365_v55, %s2059_s7  ;;  %1189 = vrot.lane.b32.xlu1 %v2358_v54, %s2059_s7  ;;  %s1384_s7 = scalar_lea.sflag [#allocation6], %s2314_s18 }
 0x221   : > { %v750_v16 = vpop.permute.xlu1 %749  ;;  %v736_v17 = vpop.permute.xlu0 %735 }
 0x222   : > { %v738_v18 = vsel %vm737_vm12, %v734_v9, %v736_v17  ;;  %v739_v19 = vsel %vm737_vm12, %v736_v17, %v734_v9  ;;  %vm1001_vm12 = vcmp.lt.s32.totalorder %v2422_v56, 115 }
 0x223   : > { %v745_v20 = vmul.f32 %v741_v2, %v739_v19  ;;  %v746_v21 = vmul.f32 %v743_v15, %v738_v18  ;;  %1207 = vrot.lane.b32.xlu0 %v2365_v55, %s2060_s22  ;;  %1205 = vrot.lane.b32.xlu1 %v2358_v54, %s2060_s22  ;;  %v869_v19 = vld [vmem:[#allocation10 + $0x98] sm:$0xff]  ;;  %s1903_s22 = scalar_lea.vmem %s2834_s27, 256 }
 0x224   : > { %p1904_p4 = scmp.ne.s32.totalorder %s2834_s27, %s1903_s22 }
 0x225   : > { %v747_v23 = vadd.f32 %v745_v20, %v715_v5  ;;  %v748_v27 = vadd.f32 %v746_v21, %v716_v6  ;;  %v766_v28 = vpop.permute.xlu1 %765  ;;  %v752_v29 = vpop.permute.xlu0 %751  ;;  %v839_v6 = vcombine.high %v837_v61, %v837_v61 }
 0x226   : > { %v2485_v30 = vsel %vm753_vm13, %v750_v16, %v752_v29  ;;  %v2487_v31 = vsel %vm753_vm13, %v752_v29, %v750_v16  ;;  %v871_v29 = vcombine.high %v869_v19, %v869_v19  ;;  %vm1017_vm13 = vcmp.lt.s32.totalorder %v2422_v56, 114  ;;  %p1905_p12 = pnand %p1904_p4, %p2965_p9 }
 0x227   : > { %1223 = vrot.lane.b32.xlu0 %v2365_v55, %s2061_s11  ;;  %1221 = vrot.lane.b32.xlu1 %v2358_v54, %s2061_s11  ;;  %s2068_s11 = smov [#allocation12]  }
 0x228   : > { %p1906_p3 = pneg %p1905_p12 }
 0x229   : > { %v782_v33 = vpop.permute.xlu1 %781  ;;  %v768_v34 = vpop.permute.xlu0 %767 }
 0x22a   : > { %v770_v35 = vsel %vm769_vm14, %v766_v28, %v768_v34  ;;  %v771_v36 = vsel %vm769_vm14, %v768_v34, %v766_v28  ;;  %vm1049_vm14 = vcmp.lt.s32.totalorder %v2422_v56, 112 }
 0x22b   : > { %v777_v37 = vmul.f32 %v773_v22, %v771_v36  ;;  %v778_v38 = vmul.f32 %v775_v32, %v770_v35  ;;  %1239 = vrot.lane.b32.xlu0 %v2365_v55, %s2062_s1  ;;  %1237 = vrot.lane.b32.xlu1 %v2358_v54, %s2062_s1  ;;  %s1907_s1 = sshll.u32 %s2068_s11, 4  ;;  %s1908_s1 = int_to_ptr.vmem [resolvable:$false] %s1907_s1 }
 0x22c   : > { %p1910_p8 = scmp.lt.s32.totalorder %s2834_s27, %s1908_s1 }
 0x22d   : > { %v779_v42 = vadd.f32 %v777_v37, %v747_v23  ;;  %v780_v43 = vadd.f32 %v778_v38, %v748_v27  ;;  %v798_v44 = vpop.permute.xlu1 %797  ;;  %v784_v45 = vpop.permute.xlu0 %783  ;;  %v901_v38 = vld [vmem:[#allocation10 + $0xa8] sm:$0xff] }
 0x22e   : > { %v2495_v46 = vsel %vm785_vm15, %v782_v33, %v784_v45  ;;  %v2497_v47 = vsel %vm785_vm15, %v784_v45, %v782_v33  ;;  %vm1081_vm15 = vcmp.lt.s32.totalorder %v2422_v56, 110 }
 0x22f   : > { %1255 = vrot.lane.b32.xlu0 %v2365_v55, %s2063_s15  ;;  %1253 = vrot.lane.b32.xlu1 %v2358_v54, %s2063_s15  ;;  %s1909_s15 = scalar_lea.vmem %s1908_s1, 512 }
 0x230   : > { %p1911_p5 = scmp.lt.s32.totalorder %s1909_s15, %s1903_s22 }
 0x231   : > { %v814_v49 = vpop.permute.xlu1 %813  ;;  %v800_v50 = vpop.permute.xlu0 %799 }
 0x232   : > { %v802_v51 = vsel %vm801_vm0, %v798_v44, %v800_v50  ;;  %v803_v52 = vsel %vm801_vm0, %v800_v50, %v798_v44  ;;  %vm1113_vm0 = vcmp.lt.s32.totalorder %v2422_v56, 99  ;;  %p1912_p7 = por %p1911_p5, %p1910_p8 }
 0x233   : > { %v809_v59 = vmul.f32 %v805_v41, %v803_v52  ;;  %v810_v60 = vmul.f32 %v807_v48, %v802_v51  ;;  %1271 = vrot.lane.b32.xlu0 %v2365_v55, %s2064_s10  ;;  %1269 = vrot.lane.b32.xlu1 %v2358_v54, %s2064_s10  ;;  %v903_v48 = vcombine.high %v901_v38, %v901_v38 }
 0x234   : > { %p1913_p11 = pnand %p1912_p7, %p1906_p3 }
 0x235   : > { %v811_v62 = vadd.f32 %v809_v59, %v779_v42  ;;  %v812_v63 = vadd.f32 %v810_v60, %v780_v43  ;;  %v830_v0 = vpop.permute.xlu1 %829  ;;  %v816_v1 = vpop.permute.xlu0 %815 }
 0x236   : > { %v2505_v2 = vsel %vm817_vm1, %v814_v49, %v816_v1  ;;  %v2507_v5 = vsel %vm817_vm1, %v816_v1, %v814_v49  ;;  %vm562_vm1 = vcmp.lt.s32.totalorder %v2422_v56, 51 }
 0x237   : > { %1287 = vrot.lane.b32.xlu0 %v2365_v55, %s2065_s30  ;;  %1285 = vrot.lane.b32.xlu1 %v2358_v54, %s2065_s30 }
 0x239   : > { %v846_v9 = vpop.permute.xlu1 %845  ;;  %v832_v10 = vpop.permute.xlu0 %831 }
 0x23a   : > { %v834_v15 = vsel %vm833_vm2, %v830_v0, %v832_v10  ;;  %v835_v16 = vsel %vm833_vm2, %v832_v10, %v830_v0  ;;  %vm1145_vm2 = vcmp.lt.s32.totalorder %v2422_v56, 97 }
 0x23b   : > { %v841_v17 = vmul.f32 %v837_v61, %v835_v16  ;;  %v842_v18 = vmul.f32 %v839_v6, %v834_v15  ;;  %1303 = vrot.lane.b32.xlu0 %v2365_v55, %s2066_s17  ;;  %1301 = vrot.lane.b32.xlu1 %v2358_v54, %s2066_s17  ;;  %v933_v61 = vld [vmem:[#allocation10 + $0xb8] sm:$0xff]  ;;  %v957_v15 = vld [vmem:[#allocation10 + $0xc8] sm:$0xff] }
 0x23c   : > { %v935_v10 = vcombine.high %v933_v61, %v933_v61 }
 0x23d   : > { %v843_v20 = vadd.f32 %v841_v17, %v811_v62  ;;  %v844_v21 = vadd.f32 %v842_v18, %v812_v63  ;;  %v862_v22 = vpop.permute.xlu1 %861  ;;  %v848_v23 = vpop.permute.xlu0 %847 }
 0x23e   : > { %v2515_v27 = vsel %vm849_vm3, %v846_v9, %v848_v23  ;;  %v2517_v28 = vsel %vm849_vm3, %v848_v23, %v846_v9  ;;  %vm1177_vm3 = vcmp.lt.s32.totalorder %v2422_v56, 95 }
 0x23f   : > { %1319 = vrot.lane.b32.xlu0 %v2365_v55, %s2067_s12  ;;  %1317 = vrot.lane.b32.xlu1 %v2358_v54, %s2067_s12 }
 0x241   : > { %v878_v32 = vpop.permute.xlu1 %877  ;;  %v864_v33 = vpop.permute.xlu0 %863 }
 0x242   : > { %v866_v34 = vsel %vm865_vm4, %v862_v22, %v864_v33  ;;  %v867_v35 = vsel %vm865_vm4, %v864_v33, %v862_v22  ;;  %v959_v22 = vcombine.high %v957_v15, %v957_v15  ;;  %vm1033_vm4 = vcmp.lt.s32.totalorder %v2422_v56, 113 }
 0x243   : > { %v873_v36 = vmul.f32 %v869_v19, %v867_v35  ;;  %v874_v37 = vmul.f32 %v871_v29, %v866_v34 }
 0x245   : > { %v875_v41 = vadd.f32 %v873_v36, %v843_v20  ;;  %v876_v42 = vadd.f32 %v874_v37, %v844_v21  ;;  %v894_v43 = vpop.permute.xlu1 %893  ;;  %v880_v44 = vpop.permute.xlu0 %879 }
 0x246   : > { %v2523_v45 = vsel %vm881_vm5, %v878_v32, %v880_v44  ;;  %v2525_v55 = vsel %vm881_vm5, %v880_v44, %v878_v32  ;;  %vm1065_vm5 = vcmp.lt.s32.totalorder %v2422_v56, 111 }
 0x249   : > { %v910_v49 = vpop.permute.xlu1 %909  ;;  %v896_v50 = vpop.permute.xlu0 %895 }
 0x24a   : > { %v898_v51 = vsel %vm897_vm6, %v894_v43, %v896_v50  ;;  %v899_v52 = vsel %vm897_vm6, %v896_v50, %v894_v43  ;;  %vm1209_vm6 = vcmp.lt.s32.totalorder %v2422_v56, 93 }
 0x24b   : > { %v905_v59 = vmul.f32 %v901_v38, %v899_v52  ;;  %v906_v60 = vmul.f32 %v903_v48, %v898_v51  ;;  %v989_v38 = vld [vmem:[#allocation10 + $0xd8] sm:$0xff] }
 0x24c   : > { %v991_v50 = vcombine.high %v989_v38, %v989_v38 }
 0x24d   : > { %v907_v62 = vadd.f32 %v905_v59, %v875_v41  ;;  %v908_v63 = vadd.f32 %v906_v60, %v876_v42  ;;  %v926_v0 = vpop.permute.xlu1 %925  ;;  %v912_v1 = vpop.permute.xlu0 %911 }
 0x24e   : > { %v2529_v6 = vsel %vm913_vm7, %v910_v49, %v912_v1  ;;  %v2531_v9 = vsel %vm913_vm7, %v912_v1, %v910_v49  ;;  %vm1097_vm7 = vcmp.lt.s32.totalorder %v2422_v56, 109 }
 0x251   : > { %v950_v16 = vpop.permute.xlu1 %949  ;;  %v928_v17 = vpop.permute.xlu0 %927 }
 0x252   : > { %v930_v18 = vsel %vm929_vm8, %v926_v0, %v928_v17  ;;  %v931_v19 = vsel %vm929_vm8, %v928_v17, %v926_v0  ;;  %vm1129_vm8 = vcmp.lt.s32.totalorder %v2422_v56, 98 }
 0x253   : > { %v937_v20 = vmul.f32 %v933_v61, %v931_v19  ;;  %v938_v21 = vmul.f32 %v935_v10, %v930_v18 }
 0x255   : > { %v939_v23 = vadd.f32 %v937_v20, %v907_v62  ;;  %v940_v29 = vadd.f32 %v938_v21, %v908_v63  ;;  %v966_v32 = vpop.permute.xlu1 %965  ;;  %v952_v33 = vpop.permute.xlu0 %951  ;;  %v1021_v63 = vld [vmem:[#allocation10 + $0xe8] sm:$0xff] }
 0x256   : > { %v954_v34 = vsel %vm953_vm9, %v950_v16, %v952_v33  ;;  %v955_v35 = vsel %vm953_vm9, %v952_v33, %v950_v16  ;;  %v1023_v18 = vcombine.high %v1021_v63, %v1021_v63  ;;  %vm1161_vm9 = vcmp.lt.s32.totalorder %v2422_v56, 96 }
 0x257   : > { %v961_v36 = vmul.f32 %v957_v15, %v954_v34  ;;  %v962_v37 = vmul.f32 %v959_v22, %v955_v35 }
 0x259   : > { %v963_v41 = vadd.f32 %v961_v36, %v939_v23  ;;  %v964_v42 = vadd.f32 %v962_v37, %v940_v29  ;;  %v982_v43 = vpop.permute.xlu1 %981  ;;  %v968_v44 = vpop.permute.xlu0 %967 }
 0x25a   : > { %v2536_v48 = vsel %vm969_vm10, %v966_v32, %v968_v44  ;;  %v2538_v49 = vsel %vm969_vm10, %v968_v44, %v966_v32  ;;  %v1053_v32 = vld [vmem:[#allocation10 + $0xf8] sm:$0xff]  ;;  %vm1241_vm10 = vcmp.lt.s32.totalorder %v2422_v56, 82 }
 0x25b   : > { %v1055_v37 = vcombine.high %v1053_v32, %v1053_v32 }
 0x25d   : > { %v998_v51 = vpop.permute.xlu1 %997  ;;  %v984_v52 = vpop.permute.xlu0 %983 }
 0x25e   : > { %v986_v59 = vsel %vm985_vm11, %v982_v43, %v984_v52  ;;  %v987_v60 = vsel %vm985_vm11, %v984_v52, %v982_v43  ;;  %vm1193_vm11 = vcmp.lt.s32.totalorder %v2422_v56, 94 }
 0x25f   : > { %v993_v61 = vmul.f32 %v989_v38, %v986_v59  ;;  %v994_v62 = vmul.f32 %v991_v50, %v987_v60 }
 0x261   : > { %v995_v0 = vadd.f32 %v993_v61, %v963_v41  ;;  %v996_v1 = vadd.f32 %v994_v62, %v964_v42  ;;  %v1014_v10 = vpop.permute.xlu1 %1013  ;;  %v1000_v15 = vpop.permute.xlu0 %999 }
 0x262   : > { %v2542_v16 = vsel %vm1001_vm12, %v998_v51, %v1000_v15  ;;  %v2544_v17 = vsel %vm1001_vm12, %v1000_v15, %v998_v51  ;;  %v1085_v51 = vld [vmem:[#allocation10 + $0x108] sm:$0xff]  ;;  %vm1225_vm12 = vcmp.lt.s32.totalorder %v2422_v56, 83 }
 0x263   : > { %v1087_v62 = vcombine.high %v1085_v51, %v1085_v51 }
 0x265   : > { %v2547_v19 = vpop.permute.xlu1 %1029  ;;  %v1016_v20 = vpop.permute.xlu0 %1015 }
 0x266   : > { %v1018_v21 = vsel %vm1017_vm13, %v1014_v10, %v1016_v20  ;;  %v1019_v22 = vsel %vm1017_vm13, %v1016_v20, %v1014_v10  ;;  %v1117_v20 = vld [vmem:[#allocation10 + $0x118] sm:$0xff]  ;;  %vm1257_vm13 = vcmp.lt.s32.totalorder %v2422_v56, 81 }
 0x267   : > { %v1025_v23 = vmul.f32 %v1021_v63, %v1018_v21  ;;  %v1026_v29 = vmul.f32 %v1023_v18, %v1019_v22 }
 0x269   : > { %v1027_v33 = vadd.f32 %v1025_v23, %v995_v0  ;;  %v1028_v34 = vadd.f32 %v1026_v29, %v996_v1  ;;  %v1046_v35 = vpop.permute.xlu1 %1045  ;;  %v2549_v36 = vpop.permute.xlu0 %1031 }
 0x26d   : > { %v2552_v38 = vpop.permute.xlu1 %1061  ;;  %v1048_v41 = vpop.permute.xlu0 %1047 }
 0x26e   : > { %v1050_v42 = vsel %vm1049_vm14, %v1046_v35, %v1048_v41  ;;  %v1051_v43 = vsel %vm1049_vm14, %v1048_v41, %v1046_v35  ;;  %v942_v41 = vld [vmem:[#allocation10 + $0xc0] sm:$0xff]  ;;  %vm1273_vm14 = vcmp.lt.s32.totalorder %v2422_v56, 80 }
 0x26f   : > { %v1057_v44 = vmul.f32 %v1053_v32, %v1050_v42  ;;  %v1058_v50 = vmul.f32 %v1055_v37, %v1051_v43  ;;  %v597_v32 = vld [vmem:[#allocation10 + $0x10] sm:$0xff]  ;;  %v629_v43 = vld [vmem:[#allocation10 + $0x20] sm:$0xff] }
 0x270   : > { %v599_v42 = vcombine.high %v597_v32, %v597_v32 }
 0x271   : > { %v1059_v52 = vadd.f32 %v1057_v44, %v1027_v33  ;;  %v1060_v59 = vadd.f32 %v1058_v50, %v1028_v34  ;;  %v1078_v60 = vpop.permute.xlu1 %1077  ;;  %v2554_v61 = vpop.permute.xlu0 %1063  ;;  %v1119_v33 = vcombine.high %v1117_v20, %v1117_v20  ;;  %v565_v34 = vld [vmem:[#allocation10] sm:$0xff]  ;;  %v661_v44 = vld [vmem:[#allocation10 + $0x30] sm:$0xff] }
 0x275   : > { %v2557_v63 = vpop.permute.xlu1 %1093  ;;  %v1080_v0 = vpop.permute.xlu0 %1079 }
 0x276   : > { %v1082_v1 = vsel %vm1081_vm15, %v1078_v60, %v1080_v0  ;;  %v1083_v10 = vsel %vm1081_vm15, %v1080_v0, %v1078_v60  ;;  %v2566_v0 = vmul.f32 %v942_v41, %v2358_v54  ;;  %vm1289_vm15 = vcmp.lt.s32.totalorder %v2422_v56, 79 }
 0x277   : > { %v1089_v15 = vmul.f32 %v1085_v51, %v1082_v1  ;;  %v1090_v18 = vmul.f32 %v1087_v62, %v1083_v10  ;;  %v1149_v62 = vld [vmem:[#allocation10 + $0x128] sm:$0xff]  ;;  %v631_v1 = vcombine.high %v629_v43, %v629_v43  ;;  %v663_v10 = vcombine.high %v661_v44, %v661_v44 }
 0x278   : > { %v1151_v41 = vcombine.high %v1149_v62, %v1149_v62 }
 0x279   : > { %v1091_v21 = vadd.f32 %v1089_v15, %v1059_v52  ;;  %v1092_v22 = vadd.f32 %v1090_v18, %v1060_v59  ;;  %v1110_v23 = vpop.permute.xlu1 %1109  ;;  %v2559_v29 = vpop.permute.xlu0 %1095  ;;  %v567_v59 = vcombine.high %v565_v34, %v565_v34  ;;  %v693_v15 = vld [vmem:[#allocation10 + $0x40] sm:$0xff]  ;;  %v725_v18 = vld [vmem:[#allocation10 + $0x50] sm:$0xff] }
 0x27a   : > { %v727_v25 = vcombine.high %v725_v18, %v725_v18 }
 0x27d   : > { %v2562_v35 = vpop.permute.xlu1 %1125  ;;  %v1112_v37 = vpop.permute.xlu0 %1111 }
 0x27e   : > { %v1114_v50 = vsel %vm1113_vm0, %v1110_v23, %v1112_v37  ;;  %v1115_v51 = vsel %vm1113_vm0, %v1112_v37, %v1110_v23  ;;  %v601_v23 = vmul.f32 %v597_v32, %v2436_v4  ;;  %v634_v4 = vmul.f32 %v631_v1, %v2444_v24  ;;  %v757_v32 = vld [vmem:[#allocation10 + $0x60] sm:$0xff] }
 0x27f   : > { %v1121_v60 = vmul.f32 %v1117_v20, %v1114_v50  ;;  %v1122_v52 = vmul.f32 %v1119_v33, %v1115_v51  ;;  %v602_v20 = vmul.f32 %v599_v42, %v2434_v3  ;;  %v695_v51 = vcombine.high %v693_v15, %v693_v15  ;;  %v789_v3 = vld [vmem:[#allocation10 + $0x70] sm:$0xff] }
 0x280   : > { %vm1305_vm0 = vcmp.lt.s32.totalorder %v2422_v56, 78 }
 0x281   : > { %v1123_v12 = vadd.f32 %v1121_v60, %v1091_v21  ;;  %v1124_v8 = vadd.f32 %v1122_v52, %v1092_v22  ;;  %v2568_v11 = vpop.permute.xlu0 %1127  ;;  %v559_v7 = vpop.permute.xlu1 %558  ;;  %v633_v22 = vmul.f32 %v629_v43, %v2446_v26  ;;  %v2585_v26 = vld [vmem:[#allocation10 + $0x90] sm:$0xff] }
 0x282   : > { %v563_v33 = vsel %vm562_vm1, %v2426_v58, %v559_v7  ;;  %v564_v37 = vsel %vm562_vm1, %v559_v7, %v2426_v58  ;;  %v665_v58 = vmul.f32 %v661_v44, %v2456_v40  ;;  %v698_v40 = vmul.f32 %v695_v51, %v2465_v53  ;;  %v2593_v21 = vld [vmem:[#allocation10 + $0xd0] sm:$0xff] }
 0x283   : > { %v569_v50 = vmul.f32 %v565_v34, %v564_v37  ;;  %v570_v54 = vmul.f32 %v567_v59, %v563_v33  ;;  %v666_v34 = vmul.f32 %v663_v10, %v2454_v39  ;;  %v821_v37 = vld [vmem:[#allocation10 + $0x80] sm:$0xff]  ;;  %v759_v44 = vcombine.high %v757_v32, %v757_v32 }
 0x284   : > { %v791_v39 = vcombine.high %v789_v3, %v789_v3  ;;  %v2589_v10 = vld [vmem:[#allocation10 + $0xa0] sm:$0xff]  ;;  %v855_v53 = vcombine.high %v2585_v26, %v2585_v26  ;;  %v729_v51 = vmul.f32 %v725_v18, %v2477_v14  ;;  %v2616_v18 = vld [vmem:[#allocation10 + $0xf0] sm:$0xff]  ;;  %vm1321_vm1 = vcmp.lt.s32.totalorder %v2422_v56, 77 }
 0x285   : > { %v603_v42 = vadd.f32 %v601_v23, %v569_v50  ;;  %v604_v60 = vadd.f32 %v602_v20, %v570_v54  ;;  %v1144_v52 = vpop.permute.xlu0 %1143  ;;  %v1142_v7 = vpop.permute.xlu1 %1141  ;;  %v1181_v20 = vld [vmem:[#allocation10 + $0x138] sm:$0xff]  ;;  %v697_v50 = vmul.f32 %v693_v15, %v2467_v57  ;;  %v2591_v54 = vld [vmem:[#allocation10 + $0xb0] sm:$0xff]  ;;  %v823_v57 = vcombine.high %v821_v37, %v821_v37 }
 0x286   : > { %v1146_v59 = vsel %vm1145_vm2, %v1142_v7, %v1144_v52  ;;  %v1147_v33 = vsel %vm1145_vm2, %v1144_v52, %v1142_v7  ;;  %v2595_v52 = vld [vmem:[#allocation10 + $0xe0] sm:$0xff]  ;;  %v1183_v15 = vcombine.high %v1181_v20, %v1181_v20  ;;  %v762_v14 = vmul.f32 %v759_v44, %v2485_v30 }
 0x287   : > { %v635_v24 = vadd.f32 %v633_v22, %v603_v42  ;;  %v636_v43 = vadd.f32 %v634_v4, %v604_v60  ;;  %v1153_v1 = vmul.f32 %v1149_v62, %v1146_v59  ;;  %v1154_v23 = vmul.f32 %v1151_v41, %v1147_v33 }
 0x288   : > { %v730_v60 = vmul.f32 %v727_v25, %v2475_v13  ;;  %v1007_v33 = vcombine.high %v2595_v52, %v2595_v52 }
 0x289   : > { %v667_v7 = vadd.f32 %v665_v58, %v635_v24  ;;  %v668_v22 = vadd.f32 %v666_v34, %v636_v43  ;;  %v1155_v4 = vadd.f32 %v1153_v1, %v1123_v12  ;;  %v1156_v62 = vadd.f32 %v1154_v23, %v1124_v8  ;;  %v2597_v41 = vpop.permute.xlu0 %1159  ;;  %v2599_v42 = vpop.permute.xlu1 %1157 }
 0x28a   : > { %v887_v8 = vcombine.high %v2589_v10, %v2589_v10  ;;  %v919_v12 = vcombine.high %v2591_v54, %v2591_v54  ;;  %v975_v34 = vcombine.high %v2593_v21, %v2593_v21  ;;  %v761_v24 = vmul.f32 %v757_v32, %v2487_v31 }
 0x28b   : > { %v699_v59 = vadd.f32 %v697_v50, %v667_v7  ;;  %v700_v58 = vadd.f32 %v698_v40, %v668_v22  ;;  %v793_v23 = vmul.f32 %v789_v3, %v2497_v47  ;;  %v794_v50 = vmul.f32 %v791_v39, %v2495_v46  ;;  %v2624_v22 = vld [vmem:[#allocation10 + $0x100] sm:$0xff]  ;;  %v2631_v47 = vld [vmem:[#allocation10 + $0x110] sm:$0xff] }
 0x28c   : > { %v1039_v46 = vcombine.high %v2616_v18, %v2616_v18  ;;  %v2633_v3 = vld [vmem:[#allocation10 + $0x120] sm:$0xff] }
 0x28d   : > { %v731_v25 = vadd.f32 %v729_v51, %v699_v59  ;;  %v732_v13 = vadd.f32 %v730_v60, %v700_v58  ;;  %v1176_v43 = vpop.permute.xlu0 %1175  ;;  %v1174_v1 = vpop.permute.xlu1 %1173  ;;  %v1213_v51 = vld [vmem:[#allocation10 + $0x148] sm:$0xff]  ;;  %v825_v60 = vmul.f32 %v821_v37, %v2507_v5  ;;  %v826_v59 = vmul.f32 %v823_v57, %v2505_v2  ;;  %v2639_v5 = vld [vmem:[#allocation10 + $0x140] sm:$0xff] }
 0x28e   : > { %v1178_v40 = vsel %vm1177_vm3, %v1174_v1, %v1176_v43  ;;  %v1179_v7 = vsel %vm1177_vm3, %v1176_v43, %v1174_v1  ;;  %v1071_v37 = vcombine.high %v2624_v22, %v2624_v22  ;;  %v1215_v57 = vcombine.high %v1213_v51, %v1213_v51 }
 0x28f   : > { %v763_v31 = vadd.f32 %v761_v24, %v731_v25  ;;  %v764_v30 = vadd.f32 %v762_v14, %v732_v13  ;;  %v1185_v32 = vmul.f32 %v1181_v20, %v1178_v40  ;;  %v1186_v44 = vmul.f32 %v1183_v15, %v1179_v7  ;;  %v2635_v24 = vld [vmem:[#allocation10 + $0x130] sm:$0xff] }
 0x290   : > { %v857_v25 = vmul.f32 %v2585_v26, %v2517_v28  ;;  %v1103_v43 = vcombine.high %v2631_v47, %v2631_v47  ;;  %v1135_v1 = vcombine.high %v2633_v3, %v2633_v3  ;;  %v889_v28 = vmul.f32 %v2589_v10, %v2525_v55 }
 0x291   : > { %v795_v39 = vadd.f32 %v793_v23, %v763_v31  ;;  %v796_v58 = vadd.f32 %v794_v50, %v764_v30  ;;  %v1187_v20 = vadd.f32 %v1185_v32, %v1155_v4  ;;  %v1188_v15 = vadd.f32 %v1186_v44, %v1156_v62  ;;  %v2637_v14 = vpop.permute.xlu0 %1191  ;;  %v2641_v2 = vpop.permute.xlu1 %1189  ;;  %v2664_v31 = vld [vmem:[#allocation10 + $0x150] sm:$0xff] }
 0x292   : > { %v858_v4 = vmul.f32 %v855_v53, %v2515_v27  ;;  %v1167_v23 = vcombine.high %v2635_v24, %v2635_v24  ;;  %v1199_v50 = vcombine.high %v2639_v5, %v2639_v5  ;;  %v890_v27 = vmul.f32 %v887_v8, %v2523_v45 }
 0x293   : > { %v827_v62 = vadd.f32 %v825_v60, %v795_v39  ;;  %v828_v13 = vadd.f32 %v826_v59, %v796_v58  ;;  %v921_v30 = vmul.f32 %v2591_v54, %v2531_v9  ;;  %v922_v32 = vmul.f32 %v919_v12, %v2529_v6  ;;  %v1245_v59 = vld [vmem:[#allocation10 + $0x158] sm:$0xff]  ;;  %v2673_v39 = vld [vmem:[#allocation10 + $0x160] sm:$0xff] }
 0x294   : > { %v1034_v9 = vsel %vm1033_vm4, %v2547_v19, %v2549_v36  ;;  %v1035_v6 = vsel %vm1033_vm4, %v2549_v36, %v2547_v19  ;;  %v1231_v54 = vcombine.high %v2664_v31, %v2664_v31  ;;  %v1067_v19 = vsel %vm1065_vm5, %v2554_v61, %v2552_v38 }
 0x295   : > { %v859_v26 = vadd.f32 %v857_v25, %v827_v62  ;;  %v860_v53 = vadd.f32 %v858_v4, %v828_v13  ;;  %v1208_v40 = vpop.permute.xlu0 %1207  ;;  %v1206_v7 = vpop.permute.xlu1 %1205  ;;  %v1066_v62 = vsel %vm1065_vm5, %v2552_v38, %v2554_v61  ;;  %v1247_v36 = vcombine.high %v1245_v59, %v1245_v59 }
 0x296   : > { %v1210_v55 = vsel %vm1209_vm6, %v1206_v7, %v1208_v40  ;;  %v1211_v45 = vsel %vm1209_vm6, %v1208_v40, %v1206_v7  ;;  %v978_v13 = vmul.f32 %v975_v34, %v2538_v49  ;;  %v1009_v61 = vmul.f32 %v2595_v52, %v2542_v16 }
 0x297   : > { %v891_v10 = vadd.f32 %v889_v28, %v859_v26  ;;  %v892_v8 = vadd.f32 %v890_v27, %v860_v53  ;;  %v1217_v44 = vmul.f32 %v1213_v51, %v1210_v55  ;;  %v1218_v60 = vmul.f32 %v1215_v57, %v1211_v45 }
 0x298   : > { %v2959_v27 = vcombine.high %v2566_v0, %v2566_v0  ;;  %v1041_v26 = vmul.f32 %v2616_v18, %v1034_v9  ;;  %v1042_v49 = vmul.f32 %v1039_v46, %v1035_v6  ;;  %v1098_v16 = vsel %vm1097_vm7, %v2557_v63, %v2559_v29 }
 0x299   : > { %v923_v12 = vadd.f32 %v921_v30, %v891_v10  ;;  %v924_v51 = vadd.f32 %v922_v32, %v892_v8  ;;  %v1219_v58 = vadd.f32 %v1217_v44, %v1187_v20  ;;  %v1220_v57 = vadd.f32 %v1218_v60, %v1188_v15  ;;  %v2686_v25 = vpop.permute.xlu0 %1223  ;;  %v2688_v4 = vpop.permute.xlu1 %1221  ;;  %v1277_v30 = vld [vmem:[#allocation10 + $0x168] sm:$0xff]  ;;  %v2736_v32 = vld [vmem:[#allocation10 + $0x170] sm:$0xff] }
 0x29a   : > { %v1263_v20 = vcombine.high %v2673_v39, %v2673_v39  ;;  %v977_v15 = vmul.f32 %v2593_v21, %v2536_v48  ;;  %v1010_v48 = vmul.f32 %v1007_v33, %v2544_v17  ;;  %v1073_v21 = vmul.f32 %v2624_v22, %v1066_v62 }
 0x29b   : > { %v947_v28 = vadd.f32 %v2566_v0, %v923_v12  ;;  %v948_v38 = vadd.f32 %v2959_v27, %v924_v51  ;;  %v1074_v0 = vmul.f32 %v1071_v37, %v1067_v19  ;;  %v1099_v17 = vsel %vm1097_vm7, %v2559_v29, %v2557_v63 }
 0x29c   : > { %v1130_v63 = vsel %vm1129_vm8, %v2562_v35, %v2568_v11  ;;  %v1131_v29 = vsel %vm1129_vm8, %v2568_v11, %v2562_v35  ;;  %v1162_v55 = vsel %vm1161_vm9, %v2599_v42, %v2597_v41  ;;  %v1163_v45 = vsel %vm1161_vm9, %v2597_v41, %v2599_v42 }
 0x29d   : > { %v979_v34 = vadd.f32 %v977_v15, %v947_v28  ;;  %v980_v53 = vadd.f32 %v978_v13, %v948_v38  ;;  %v1240_v40 = vpop.permute.xlu0 %1239  ;;  %v1238_v7 = vpop.permute.xlu1 %1237  ;;  %v1279_v6 = vcombine.high %v1277_v30, %v1277_v30  ;;  %v1295_v11 = vcombine.high %v2736_v32, %v2736_v32  ;;  %v1309_v15 = vld [vmem:[#allocation10 + $0x178] sm:$0xff] }
 0x29e   : > { %v1242_v52 = vsel %vm1241_vm10, %v1238_v7, %v1240_v40  ;;  %v1243_v33 = vsel %vm1241_vm10, %v1240_v40, %v1238_v7  ;;  %v1105_v35 = vmul.f32 %v2631_v47, %v1098_v16  ;;  %v1106_v41 = vmul.f32 %v1103_v43, %v1099_v17 }
 0x29f   : > { %v1011_v18 = vadd.f32 %v1009_v61, %v979_v34  ;;  %v1012_v22 = vadd.f32 %v1010_v48, %v980_v53  ;;  %v1249_v46 = vmul.f32 %v1245_v59, %v1242_v52  ;;  %v1250_v37 = vmul.f32 %v1247_v36, %v1243_v33  ;;  %v1325_v53 = vld [vmem:[#allocation10 + $0x180] sm:$0xff] }
 0x2a0   : > { %v1137_v51 = vmul.f32 %v2633_v3, %v1130_v63  ;;  %v1170_v62 = vmul.f32 %v1167_v23, %v1163_v45  ;;  %v1194_v47 = vsel %vm1193_vm11, %v2641_v2, %v2637_v14  ;;  %v1195_v43 = vsel %vm1193_vm11, %v2637_v14, %v2641_v2 }
 0x2a1   : > { %v1043_v10 = vadd.f32 %v1041_v26, %v1011_v18  ;;  %v1044_v8 = vadd.f32 %v1042_v49, %v1012_v22  ;;  %v1251_v44 = vadd.f32 %v1249_v46, %v1219_v58  ;;  %v1252_v60 = vadd.f32 %v1250_v37, %v1220_v57  ;;  %v1256_v59 = vpop.permute.xlu0 %1255  ;;  %v1254_v9 = vpop.permute.xlu1 %1253 }
 0x2a2   : > { %v1138_v58 = vmul.f32 %v1135_v1, %v1131_v29  ;;  %v1169_v57 = vmul.f32 %v2635_v24, %v1162_v55  ;;  %v1226_v24 = vsel %vm1225_vm12, %v2688_v4, %v2686_v25  ;;  %v1227_v23 = vsel %vm1225_vm12, %v2686_v25, %v2688_v4 }
 0x2a3   : > { %v1075_v42 = vadd.f32 %v1073_v21, %v1043_v10  ;;  %v1076_v12 = vadd.f32 %v1074_v0, %v1044_v8  ;;  %v1201_v61 = vmul.f32 %v2639_v5, %v1194_v47  ;;  %v1202_v48 = vmul.f32 %v1199_v50, %v1195_v43 }
 0x2a4   : > { %v1311_v26 = vcombine.high %v1309_v15, %v1309_v15  ;;  %v1233_v40 = vmul.f32 %v2664_v31, %v1226_v24  ;;  %v1234_v7 = vmul.f32 %v1231_v54, %v1227_v23  ;;  %v1258_v5 = vsel %vm1257_vm13, %v1254_v9, %v1256_v59 }
 0x2a5   : > { %v1107_v19 = vadd.f32 %v1105_v35, %v1075_v42  ;;  %v1108_v36 = vadd.f32 %v1106_v41, %v1076_v12  ;;  %v1272_v3 = vpop.permute.xlu0 %1271  ;;  %v1270_v1 = vpop.permute.xlu1 %1269  ;;  %v1259_v50 = vsel %vm1257_vm13, %v1256_v59, %v1254_v9  ;;  %v1327_v18 = vcombine.high %v1325_v53, %v1325_v53 }
 0x2a6   : > { %v1274_v13 = vsel %vm1273_vm14, %v1270_v1, %v1272_v3  ;;  %v1275_v28 = vsel %vm1273_vm14, %v1272_v3, %v1270_v1  ;;  %v1265_v54 = vmul.f32 %v2673_v39, %v1258_v5  ;;  %v1266_v46 = vmul.f32 %v1263_v20, %v1259_v50  ;;  %v2963_v50 = vld [vmem:[#allocation25_spill] sm:$0xff] }
 0x2a7   : > { %v1139_v14 = vadd.f32 %v1137_v51, %v1107_v19  ;;  %v1140_v2 = vadd.f32 %v1138_v58, %v1108_v36  ;;  %v1281_v27 = vmul.f32 %v1277_v30, %v1274_v13  ;;  %v1282_v38 = vmul.f32 %v1279_v6, %v1275_v28 }
 0x2a8   : > { %v1344_v36 = vstv %s1335_s21 }
 0x2a9   : > { %v1171_v25 = vadd.f32 %v1169_v57, %v1139_v14  ;;  %v1172_v4 = vadd.f32 %v1170_v62, %v1140_v2  ;;  %v1283_v49 = vadd.f32 %v1281_v27, %v1251_v44  ;;  %v1284_v21 = vadd.f32 %v1282_v38, %v1252_v60  ;;  %v1288_v0 = vpop.permute.xlu0 %1287  ;;  %v1286_v34 = vpop.permute.xlu1 %1285 }
 0x2aa   : > { %v1290_v52 = vsel %vm1289_vm15, %v1286_v34, %v1288_v0  ;;  %v1291_v33 = vsel %vm1289_vm15, %v1288_v0, %v1286_v34 }
 0x2ab   : > { %v1203_v16 = vadd.f32 %v1201_v61, %v1171_v25  ;;  %v1204_v17 = vadd.f32 %v1202_v48, %v1172_v4  ;;  %v1297_v63 = vmul.f32 %v2736_v32, %v1290_v52  ;;  %v1298_v29 = vmul.f32 %v1295_v11, %v1291_v33  ;;  %v2960_v61 = vld [vmem:[#allocation28_spill] sm:$0xff] }
 0x2ac   : > { %v1361_v48 = vsub.s32 0, %v2960_v61 }
 0x2ad   : > { %v1235_v22 = vadd.f32 %v1233_v40, %v1203_v16  ;;  %v1236_v31 = vadd.f32 %v1234_v7, %v1204_v17  ;;  %v1304_v37 = vpop.permute.xlu0 %1303  ;;  %v1302_v30 = vpop.permute.xlu1 %1301  ;;  %v2962_v7 = vld [vmem:[#allocation26_spill] sm:$0xff]  ;;  %v2964_v17 = vld [vmem:[#allocation27_spill] sm:$0xff] }
 0x2ae   : > { %v1306_v55 = vsel %vm1305_vm0, %v1302_v30, %v1304_v37  ;;  %v1307_v45 = vsel %vm1305_vm0, %v1304_v37, %v1302_v30 }
 0x2af   : > { %v1267_v10 = vadd.f32 %v1265_v54, %v1235_v22  ;;  %v1268_v8 = vadd.f32 %v1266_v46, %v1236_v31  ;;  %v1313_v44 = vmul.f32 %v1309_v15, %v1306_v55  ;;  %v1314_v60 = vmul.f32 %v1311_v26, %v1307_v45 }
 0x2b0   : > { %v1373_v26 = vsub.s32 2, %v2960_v61 }
 0x2b1   : > { %v1299_v59 = vadd.f32 %v1297_v63, %v1267_v10  ;;  %v1300_v9 = vadd.f32 %v1298_v29, %v1268_v8  ;;  %v1315_v6 = vadd.f32 %v1313_v44, %v1283_v49  ;;  %v1316_v39 = vadd.f32 %v1314_v60, %v1284_v21  ;;  %v1320_v20 = vpop.permute.xlu0 %1319  ;;  %v1318_v35 = vpop.permute.xlu1 %1317 }
 0x2b2   : > { %v1322_v32 = vsel %vm1321_vm1, %v1318_v35, %v1320_v20  ;;  %v1323_v11 = vsel %vm1321_vm1, %v1320_v20, %v1318_v35 }
 0x2b3   : > { %v1329_v41 = vmul.f32 %v1325_v53, %v1322_v32  ;;  %v1330_v42 = vmul.f32 %v1327_v18, %v1323_v11  ;;  %v2961_v53 = vld [vmem:[#allocation24_spill] sm:$0xff] }
 0x2b5   : > { %v1331_v12 = vadd.f32 %v1329_v41, %v1299_v59  ;;  %v1332_v51 = vadd.f32 %v1330_v42, %v1300_v9 }
 0x2b7   : > { %v1333_v58 = vadd.f32 %v1331_v12, %v1315_v6  ;;  %v1334_v57 = vadd.f32 %v1332_v51, %v1316_v39 }
 0x2b9   : > { %v1338_v62 = vrot.slane %v1333_v58, 1  ;;  %v1339_v19 = vrot.slane %v1334_v57, 1 }
 0x2bb   : > { %v1342_v47 = vadd.f32 %v1338_v62, %v1333_v58  ;;  %v1343_v43 = vadd.f32 %v1339_v19, %v1334_v57 }
 0x2bd   : > { %v1345_v3 = vadd.f32 %v1344_v36, %v1342_v47  ;;  %v1346_v1 = vadd.f32 %v1344_v36, %v1343_v43 }
 0x2bf   : > { %v1347_v15 = vmax.f32 %v1345_v3, 0.0  ;;  %v1348_v24 = vmax.f32 %v1346_v1, 0.0 }
 0x2c1   : > { %v1349_v23 = vsub.f32 0.0, %v1347_v15  ;;  %v1350_v13 = vsub.f32 0.0, %v1348_v24 }
 0x2c3   : > { %v1351_v56 = vmul.f32 1.442695, %v1349_v23  ;;  %v1353_v28 = vmul.f32 1.442695, %v1350_v13 }
 0x2c5   : > { %1777 = vpow2.f32 %v1351_v56 }
 0x2c6   : > { %1779 = vpow2.f32 %v1353_v28 }
 0x2cf   : > { %v1778_v14 = vpop.eup %1777 }
 0x2d0   : > { %v1780_v2 = vpop.eup %1779  ;;  %v1355_v27 = vadd.f32 1.0, %v1778_v14 }
 0x2d1   : > { %v1356_v38 = vadd.f32 1.0, %v1780_v2 }
 0x2d2   : > { %1781 = vrcp.f32 %v1355_v27 }
 0x2d3   : > { %1783 = vrcp.f32 %v1356_v38 }
 0x2dc   : > { %v1782_v25 = vpop.eup %1781 }
 0x2dd   : > { %v1784_v4 = vpop.eup %1783  ;;  %v1362_v49 = vrot.slane %v1782_v25, %v1361_v48  ;;  %v1374_v21 = vrot.slane %v1782_v25, %v1373_v26 }
 0x2de   : > { %v1366_v0 = vrot.slane %v1784_v4, %v1361_v48  ;;  %v1378_v34 = vrot.slane %v1784_v4, %v1373_v26 }
 0x2df   : > { %v1367_v40 = vmul.f32 %v1362_v49, %v2961_v53  ;;  %v1379_v5 = vmul.f32 %v1374_v21, %v2962_v7 }
 0x2e0   : > { %v1368_v16 = vmul.f32 %v1366_v0, %v2963_v50  ;;  %v1380_v52 = vmul.f32 %v1378_v34, %v2964_v17 }
 0x2e1   : > { %1369 = vst [vmem:[%s358_s4] sm:$0xff] %v1367_v40  ;;  %1381 = vst [vmem:[%s365_s9] sm:$0xff] %v1379_v5 }
 0x2e2   : > { %1370 = vst [vmem:[%s358_s4 + $0x8] sm:$0xff] %v1368_v16  ;;  %1382 = vst [vmem:[%s365_s9 + $0x8] sm:$0xff] %v1380_v52 }
 0x2e3   : > { %1916 = shalt.err (!%p1913_p11)
}
 0x2e4   : > { %s1917_s10 = scalar_lea.hbm %s2830_s28, 256  ;;  %s1921_s12 = scalar_lea.hbm %s2911_s5, 512 }
 0x2e5   : > { %p1918_p2 = scmp.ne.s32.totalorder %s2830_s28, %s1917_s10  ;;  %p1922_p6 = scmp.lt.u32.totalorder %s2830_s28, %s2911_s5 }
 0x2e6   : > { %p1923_p1 = scmp.lt.u32.totalorder %s1921_s12, %s1917_s10  ;;  %p1925_p4 = scmp.lt.u32.totalorder %s1917_s10, %s2830_s28 }
 0x2e7   : > { %p1919_p13 = pnand %p1918_p2, %p2965_p9 }
 0x2e8   : > { %p1924_p0 = por %p1923_p1, %p1922_p6 }
 0x2e9   : > { %p1920_p10 = pneg %p1919_p13 }
 0x2ea   : > { %p1926_p12 = por %p1925_p4, %p1924_p0 }
 0x2ec   : > { %p1927_p3 = pnand %p1926_p12, %p1920_p10 }
 0x2ee   : > { %1930 = shalt.err (!%p1927_p3)
}
 0x2ef   : > { %1612 = dma.vmem_to_hbm [thread:$0]  (%p2965_p9), %s2834_s27, 256, %s2830_s28, %s1384_s7  }
 0x2f0   : > { %s1389_s4 = scalar_lea.sflag [#allocation14], %s2314_s18  ;;  %s1931_s9 = scalar_lea.vmem %s2842_s16, 256 }
 0x2f1   : > { %p1932_p8 = scmp.ne.s32.totalorder %s2842_s16, %s1931_s9  ;;  %s2069_s20 = smov [#allocation13]  }
 0x2f2   : > { %s1935_s8 = sshll.u32 %s2069_s20, 4  ;;  %s1936_s8 = int_to_ptr.vmem [resolvable:$false] %s1935_s8 }
 0x2f3   : > { %p1933_p5 = pnand %p1932_p8, %p2965_p9  ;;  %s1937_s14 = scalar_lea.vmem %s1936_s8, 512 }
 0x2f4   : > { %p1938_p11 = scmp.lt.s32.totalorder %s2842_s16, %s1936_s8  ;;  %p1939_p2 = scmp.lt.s32.totalorder %s1937_s14, %s1931_s9 }
 0x2f5   : > { %p1934_p7 = pneg %p1933_p5 }
 0x2f6   : > { %p1940_p13 = por %p1939_p2, %p1938_p11 }
 0x2f8   : > { %p1941_p10 = pnand %p1940_p13, %p1934_p7 }
 0x2fa   : > { %1944 = shalt.err (!%p1941_p10)
}
 0x2fb   : > { %s1945_s18 = scalar_lea.hbm %s2840_s19, 256  ;;  %s1949_s29 = scalar_lea.hbm %s2912_s6, 512 }
 0x2fc   : > { %p1946_p6 = scmp.ne.s32.totalorder %s2840_s19, %s1945_s18  ;;  %p1950_p4 = scmp.lt.u32.totalorder %s2840_s19, %s2912_s6 }
 0x2fd   : > { %p1951_p12 = scmp.lt.u32.totalorder %s1949_s29, %s1945_s18  ;;  %p1953_p8 = scmp.lt.u32.totalorder %s1945_s18, %s2840_s19 }
 0x2fe   : > { %p1947_p1 = pnand %p1946_p6, %p2965_p9 }
 0x2ff   : > { %p1952_p3 = por %p1951_p12, %p1950_p4 }
 0x300   : > { %p1948_p0 = pneg %p1947_p1 }
 0x301   : > { %p1954_p5 = por %p1953_p8, %p1952_p3 }
 0x303   : > { %p1955_p7 = pnand %p1954_p5, %p1948_p0 }
 0x305   : > { %1958 = shalt.err (!%p1955_p7)
}
 0x306   : > { %1613 = dma.vmem_to_hbm [thread:$0]  (%p2965_p9), %s2842_s16, 256, %s2840_s19, %s1389_s4  }
 0x307 PF: > { %s2966_s11 = sld [smem:[#allocation23_spill]]  ;;  %s1429_s1 = sand.u32 1, %s1997_s23  }
 0x308   : > { %p2968_p2 = scmp.ge.s32.totalorder %s2009_s26, 2  ;;  %s1430_s15 = scalar_lea.sflag [#allocation6], %s1429_s1 }
 0x30d   : > { %p2967_p11 = scmp.ne.s32.totalorder %s2966_s11, 0 }
 0x30f   : > { %p1631_p13 = pnand %p2968_p2, %p2967_p11 }
 0x311   : > { %1988 = dma.done.wait (!%p1631_p13), %s1430_s15, 256  }
 0x312   : > { %1990 = vsyncadd (!%p1631_p13), %s1430_s15, 4294967040  ;;  %s1439_s10 = scalar_lea.sflag [#allocation14], %s1429_s1 }
 0x313   : > { %1992 = dma.done.wait (!%p1631_p13), %s1439_s10, 256  }
 0x314   : > { %1994 = vsyncadd (!%p1631_p13), %s1439_s10, 4294967040  ;;  %s2969_s26 = sld [smem:[#allocation21_spill]]  ;;  %s2970_s13 = sld [smem:[#allocation20_spill]] }
 0x315   : > { %s2971_s25 = sld [smem:[#allocation22_spill]]  ;;  %s2972_s23 = smov %s2001_s24 }
 0x31a   : > { %p28_p9 = scmp.ge.s32.totalorder %s2969_s26, 4   ;;  %s2973_s24 = smov %s2970_s13 }
 0x31c   :  { %30 = sbr.rel (!%p28_p9) target bundleno = 13 (0xd), region = 181 }
 0x323   :  { %1444 = vsyncpa [#allocation5], 1 }
 0x324   :  { %1446 = vsyncpa [#allocation5 + $0x1], 1 }
 0x325   :  { %1447 = vsyncpa [#allocation8], 1 }
 0x326   :  { %1449 = vsyncpa [#allocation8 + $0x1], 1 }
 0x327   :  { %1450 = vsyncpa [#allocation11], 1 }
 0x328   :  { %1451 = vsyncpa [#allocation6], 1 }
 0x329   :  { %1453 = vsyncpa [#allocation6 + $0x1], 1 }
 0x32a   :  { %1454 = vsyncpa [#allocation14], 1 }
 0x32b   :  { %1456 = vsyncpa [#allocation14 + $0x1], 1 }

</bundles_post_ra>
